<compile_context>
chip_gen: v7x
topology: tpu7x:2x2x1
jax: 0.10.0
libtpu: 0.0.40
codegen_flags: <defaults>
</compile_context>

<pallas_src>
import math

import jax
import jax.numpy as jnp
import numpy as np
from jax.experimental import pallas as pl
from jax.experimental.pallas import tpu as pltpu


# ----------------------------- Pallas kernel ------------------------------- #

def patch_embed_kernel(p_ref, w_ref, b_ref, o_ref):
    # p_ref: (TM, K) patch rows, w_ref: (K, E) weights, b_ref: (1, E) bias.
    acc = jnp.dot(p_ref[...], w_ref[...],
                  preferred_element_type=jnp.float32,
                  precision=jax.lax.Precision.HIGHEST)
    o_ref[...] = (acc + b_ref[...]).astype(o_ref.dtype)


# ------------------------------ host wrapper -------------------------------- #

def patch_embed(x, weight, bias, patch_size):
    """x: [B, C, H, W]; weight: [E, C, Ph, Pw]; bias: [E].
    Returns [B, num_patches, E] (same as PyTorch PatchEmbed.forward)."""
    if isinstance(patch_size, int):
        patch_size = (patch_size, patch_size)
    Ph, Pw = patch_size
    B, C, H, W = x.shape
    E = weight.shape[0]
    gh, gw = H // Ph, W // Pw
    n_patches = gh * gw
    N = B * n_patches
    K = C * Ph * Pw

    # --- patch extraction: pure layout (reshape/transpose), no compute ---
    # (B, C, gh, Ph, gw, Pw) -> (B, gh, gw, C, Ph, Pw) -> (N, K), where the
    # flattened patch order (C, Ph, Pw) matches weight.reshape(E, K).
    patches = (x.reshape(B, C, gh, Ph, gw, Pw)
                .transpose(0, 2, 4, 1, 3, 5)
                .reshape(N, K))
    w2 = weight.reshape(E, K).T          # (K, E)
    b2 = bias.reshape(1, E)

    # --- token-tile size: big tiles to amortize per-step overhead, always a
    #     multiple of 8 so the BlockSpec satisfies the (8, 128) rule. ---
    if N >= 256:
        TM = 256
    elif N >= 128:
        TM = 128
    else:
        TM = max(8, ((N + 7) // 8) * 8)
    N_pad = pl.cdiv(N, TM) * TM
    if N_pad != N:
        patches = jnp.pad(patches, ((0, N_pad - N), (0, 0)))

    out = pl.pallas_call(
        patch_embed_kernel,
        out_shape=jax.ShapeDtypeStruct((N_pad, E), x.dtype),
        grid=(N_pad // TM,),
        in_specs=[
            pl.BlockSpec((TM, K), lambda i: (i, 0)),   # patch rows, tiled
            pl.BlockSpec((K, E), lambda i: (0, 0)),    # weights: VMEM-resident
            pl.BlockSpec((1, E), lambda i: (0, 0)),    # bias:   VMEM-resident
        ],
        out_specs=pl.BlockSpec((TM, E), lambda i: (i, 0)),
        compiler_params=pltpu.CompilerParams(
            dimension_semantics=("parallel",)),
    )(patches, w2, b2)

    return out[:N].reshape(B, n_patches, E)


# ------------------------------ pure-JAX reference --------------------------- #

def patch_embed_reference(x, weight, bias, patch_size):
    if isinstance(patch_size, int):
        patch_size = (patch_size, patch_size)
    y = jax.lax.conv_general_dilated(
        x, weight, window_strides=patch_size, padding="VALID",
        dimension_numbers=("NCHW", "OIHW", "NCHW"),
        precision=jax.lax.Precision.HIGHEST)
    y = y + bias.reshape(1, -1, 1, 1)
    B, E, gh, gw = y.shape
    return y.reshape(B, E, gh * gw).transpose(0, 2, 1)


# ----------------------------------- main ------------------------------------ #

if __name__ == "__main__":
    # Small shapes consistent with the module: img 32x32, patch 16 -> 2x2 grid.
    B, C, img_size, P, E = 2, 3, 32, 16, 128

    key = jax.random.PRNGKey(0)
    kx, kw, kb = jax.random.split(key, 3)
    x = jax.random.normal(kx, (B, C, img_size, img_size), jnp.float32)
    fan_in = C * P * P
    weight = jax.random.normal(kw, (E, C, P, P), jnp.float32) / math.sqrt(fan_in)
    bias = 0.02 * jax.random.normal(kb, (E,), jnp.float32)

    out = patch_embed(x, weight, bias, P)
    out = jax.block_until_ready(out)

    ref = patch_embed_reference(x, weight, bias, P)
    np.testing.assert_allclose(np.asarray(out), np.asarray(ref),
                               rtol=1e-4, atol=1e-4)
    print("KERNEL_OK")
</pallas_src>

<mosaic_0001>
module attributes {stable_mosaic.version = 11 : i64} {
  func.func @patch_embed_kernel(%arg0: i32, %arg1: memref<8x768xf32, #tpu.memory_space<vmem>>, %arg2: memref<768x128xf32, #tpu.memory_space<vmem>>, %arg3: memref<1x128xf32, #tpu.memory_space<vmem>>, %arg4: memref<8x128xf32, #tpu.memory_space<vmem>>) attributes {dimension_semantics = [#tpu.dimension_semantics<parallel>], iteration_bounds = array<i64: 1>, scalar_prefetch = 0 : i64, scratch_operands = 0 : i64, tpu.core_type = #tpu.core_type<tc>, window_params = [{transform_indices = @transform_0, window_bounds = array<i64: 8, 768>}, {pipeline_mode = #tpu.pipeline_mode<synchronous>, transform_indices = @transform_1, window_bounds = array<i64: 768, 128>}, {pipeline_mode = #tpu.pipeline_mode<synchronous>, transform_indices = @transform_2, window_bounds = array<i64: 1, 128>}, {transform_indices = @transform_3, window_bounds = array<i64: 8, 128>}]} {
    %c0 = arith.constant 0 : index
    %c0_0 = arith.constant 0 : index
    %0 = vector.load %arg1[%c0, %c0_0] : memref<8x768xf32, #tpu.memory_space<vmem>>, vector<8x768xf32>
    %c0_1 = arith.constant 0 : index
    %c0_2 = arith.constant 0 : index
    %1 = vector.load %arg2[%c0_1, %c0_2] : memref<768x128xf32, #tpu.memory_space<vmem>>, vector<768x128xf32>
    %cst = arith.constant dense<0.000000e+00> : vector<8x128xf32>
    %2 = tpu.matmul %0, %1, %cst {dimension_numbers = #tpu.dot_dimension_numbers<[1], [0], [0], [1], [0, 0, 1, 1], [], []>, precision = #tpu.contract_precision<fp32>} : vector<8x768xf32>, vector<768x128xf32>, vector<8x128xf32> -> vector<8x128xf32>
    %c0_3 = arith.constant 0 : index
    %c0_4 = arith.constant 0 : index
    %3 = vector.load %arg3[%c0_3, %c0_4] : memref<1x128xf32, #tpu.memory_space<vmem>>, vector<1x128xf32>
    %4 = vector.broadcast %3 : vector<1x128xf32> to vector<8x128xf32>
    %5 = arith.addf %2, %4 : vector<8x128xf32>
    %c0_5 = arith.constant 0 : index
    %c0_6 = arith.constant 0 : index
    %6 = vector.load %arg4[%c0_5, %c0_6] : memref<8x128xf32, #tpu.memory_space<vmem>>, vector<8x128xf32>
    tpu.vector_store %arg4[%c0_5, %c0_6], %5 {strides = array<i32>} : memref<8x128xf32, #tpu.memory_space<vmem>>, vector<8x128xf32>,
    return
  }
  func.func @transform_0(%arg0: i32) -> (i32, i32) {
    %c0_i32 = arith.constant 0 : i32
    %c0_i32_0 = arith.constant 0 : i32
    return %arg0, %c0_i32 : i32, i32
  }
  func.func @transform_1(%arg0: i32) -> (i32, i32) {
    %c0_i32 = arith.constant 0 : i32
    %c0_i32_0 = arith.constant 0 : i32
    %c0_i32_1 = arith.constant 0 : i32
    return %c0_i32, %c0_i32_0 : i32, i32
  }
  func.func @transform_2(%arg0: i32) -> (i32, i32) {
    %c0_i32 = arith.constant 0 : i32
    %c0_i32_0 = arith.constant 0 : i32
    %c0_i32_1 = arith.constant 0 : i32
    return %c0_i32, %c0_i32_0 : i32, i32
  }
  func.func @transform_3(%arg0: i32) -> (i32, i32) {
    %c0_i32 = arith.constant 0 : i32
    %c0_i32_0 = arith.constant 0 : i32
    return %arg0, %c0_i32 : i32, i32
  }
}

</mosaic_0001>

<bundles_post_ra>
// kernel: tpu_custom_call.1
= control target key start
LH: loop header
LB: loop body
LE: loop exit
PB: predicated region body
PF: predicated region fallthrough
CT: control target
= control target key end

     0   :  { %8 = vsyncpa [#allocation3], 0  ;;  %s5432_s0 = inlined_call_operand.hbm [shape: f32[8,768], index: 0, kind: input, shape index: {}]   ;;  %s5433_s1 = inlined_call_operand.hbm [shape: f32[768,128], index: 1, kind: input, shape index: {}]   ;;  %s5434_s2 = inlined_call_operand.vmem [shape: f32[1,128], index: 2, kind: input, shape index: {}]   ;;  %s5435_s3 = inlined_call_operand.hbm [shape: f32[8,128], index: 3, kind: output, shape index: {}]  }
   0x1   :  { %9 = vsyncpa [#allocation6], 0 }
   0x2   :  { %10 = vsyncpa [#allocation4], 0  ;;  %s4037_s12 = smov [#allocation2]   ;;  %s4038_s14 = smov [#allocation5]  }
   0x3   :  { %s17_s13 = sshll.u32 %s4037_s12, 4  ;;  %s26_s15 = sshll.u32 %s4038_s14, 4  ;;  %s18_s13 = int_to_ptr.vmem [resolvable:$true] %s17_s13  ;;  %s4062_s15 = int_to_ptr.vmem [resolvable:$true] %s26_s15 }
   0x4   :  { %s3965_s18 = scalar_lea.hbm %s5432_s0, 768 }
   0x5   :  { %p3966_p0 = scmp.ne.s32.totalorder %s5432_s0, %s3965_s18  ;;  %p3969_p1 = scmp.lt.u32.totalorder %s3965_s18, %s5432_s0 }
   0x7   :  { %p3971_p2 = pnand %p3969_p1, %p3966_p0 }
   0x9   :  { %3974 = shalt.err (!%p3971_p2)
}
   0xa   :  { %s3975_s23 = scalar_lea.vmem %s18_s13, 768  ;;  %p3980_p4 = scmp.lt.s32.totalorder %s18_s13, %s18_s13 }
   0xb   :  { %p3976_p3 = scmp.ne.s32.totalorder %s18_s13, %s3975_s23  ;;  %p3981_p5 = scmp.lt.s32.totalorder %s3975_s23, %s3975_s23 }
   0xd   :  { %p3982_p6 = por %p3981_p5, %p3980_p4 }
   0xf   :  { %p3983_p7 = pnand %p3982_p6, %p3976_p3 }
  0x11   :  { %3986 = shalt.err (!%p3983_p7)
}
  0x12   :  { %20 = dma.hbm_to_vmem [thread:$0]  %s5432_s0, 768, %s18_s13, [#allocation3]  }
  0x13   :  { %s3987_s28 = scalar_lea.hbm %s5433_s1, 12288 }
  0x14   :  { %p3988_p8 = scmp.ne.s32.totalorder %s5433_s1, %s3987_s28  ;;  %p3991_p9 = scmp.lt.u32.totalorder %s3987_s28, %s5433_s1 }
  0x16   :  { %p3993_p10 = pnand %p3991_p9, %p3988_p8 }
  0x18   :  { %3996 = shalt.err (!%p3993_p10)
}
  0x19   :  { %s3997_s6 = scalar_lea.vmem %s4062_s15, 12288  ;;  %p4002_p12 = scmp.lt.s32.totalorder %s4062_s15, %s4062_s15 }
  0x1a   :  { %p3998_p11 = scmp.ne.s32.totalorder %s4062_s15, %s3997_s6  ;;  %p4003_p13 = scmp.lt.s32.totalorder %s3997_s6, %s3997_s6 }
  0x1c   :  { %p4004_p0 = por %p4003_p13, %p4002_p12 }
  0x1e   :  { %p4005_p1 = pnand %p4004_p0, %p3998_p11 }
  0x20   :  { %4008 = shalt.err (!%p4005_p1)
}
  0x21   :  { %s4039_s0 = smov 128   ;;  %s4040_s7 = smov 8  }
  0x22   :  { %32 = dma.hbm_to_vmem [thread:$0]  %s5433_s1, 12288, %s4062_s15, [#allocation6], %s4039_s0, %s4039_s0, %s4040_s7  }
  0x23   :  { %4031 = dma.done.wait [#allocation3], 768  }
  0x24   :  { %4032 = vsyncadd [#allocation3], 4294966528 }
  0x25   :  { %4033 = dma.done.wait [#allocation6], 12288  }
  0x26   :  { %4034 = vsyncadd [#allocation6], 4294955008  ;;  %v63_v0 = vld [vmem:[#allocation5 + $0x80] sm:$0xff]  ;;  %v64_v1 = vld [vmem:[#allocation5 + $0x88] sm:$0xff] }
  0x27   :  { %v47_v2 = vld [vmem:[#allocation5] sm:$0xff]  ;;  %v199_v3 = vand.u32 4294901760, %v63_v0  ;;  %v202_v4 = vand.u32 4294901760, %v64_v1  ;;  %v48_v5 = vld [vmem:[#allocation5 + $0x8] sm:$0xff]  ;;  %v65_v7 = vld [vmem:[#allocation5 + $0x90] sm:$0xff] }
  0x28   :  { %v151_v6 = vand.u32 4294901760, %v47_v2  ;;  %v66_v8 = vld [vmem:[#allocation5 + $0x98] sm:$0xff]  ;;  %v154_v9 = vand.u32 4294901760, %v48_v5  ;;  %v205_v10 = vand.u32 4294901760, %v65_v7  ;;  %v49_v12 = vld [vmem:[#allocation5 + $0x10] sm:$0xff]  ;;  %v67_v18 = vld [vmem:[#allocation5 + $0xa0] sm:$0xff] }
  0x29   :  { %v208_v11 = vand.u32 4294901760, %v66_v8  ;;  %v50_v13 = vld [vmem:[#allocation5 + $0x18] sm:$0xff]  ;;  %v4093_v14 = vpack.c.bf16 %v202_v4, %v199_v3  ;;  %v157_v16 = vand.u32 4294901760, %v49_v12  ;;  %v68_v19 = vld [vmem:[#allocation5 + $0xa8] sm:$0xff]  ;;  %v51_v23 = vld [vmem:[#allocation5 + $0x20] sm:$0xff]  ;;  %v211_v29 = vand.u32 4294901760, %v67_v18 }
  0x2a   :  { %v4095_v15 = vsub.f32 %v47_v2, %v151_v6  ;;  %v160_v17 = vand.u32 4294901760, %v50_v13  ;;  %v4097_v20 = vpack.c.bf16 %v154_v9, %v151_v6  ;;  %v4099_v21 = vsub.f32 %v48_v5, %v154_v9  ;;  %v52_v24 = vld [vmem:[#allocation5 + $0x28] sm:$0xff]  ;;  %v69_v37 = vld [vmem:[#allocation5 + $0xb0] sm:$0xff]  ;;  %v70_v42 = vld [vmem:[#allocation5 + $0xb8] sm:$0xff] }
  0x2b   :  { %v4101_v22 = vpack.c.bf16 %v208_v11, %v205_v10  ;;  %3385 = vmatprep.subr.bf16.mxu0 %v4093_v14  ;;  %v4104_v25 = vsub.f32 %v65_v7, %v205_v10  ;;  %v4106_v26 = vsub.f32 %v66_v8, %v208_v11  ;;  %v4110_v28 = vsub.f32 %v49_v12, %v157_v16  ;;  %v53_v55 = vld [vmem:[#allocation5 + $0x30] sm:$0xff]  ;;  %v54_v56 = vld [vmem:[#allocation5 + $0x38] sm:$0xff]  ;;  %v71_v5 = vld [vmem:[#allocation5 + $0xc0] sm:$0xff] }
  0x2c   :  { %v4108_v27 = vpack.c.bf16 %v160_v17, %v157_v16  ;;  %3387 = vmatpush3.bf16.msra.mxu0 %v4097_v20  ;;  %v214_v30 = vand.u32 4294901760, %v68_v19  ;;  %v4113_v31 = vsub.f32 %v63_v0, %v199_v3  ;;  %v4115_v32 = vsub.f32 %v64_v1, %v202_v4  ;;  %v72_v6 = vld [vmem:[#allocation5 + $0xc8] sm:$0xff]  ;;  %v55_v11 = vld [vmem:[#allocation5 + $0x40] sm:$0xff] }
  0x2d   :  { %3389 = vmatprep.subr.bf16.mxu0 %v4101_v22  ;;  %v163_v33 = vand.u32 4294901760, %v51_v23  ;;  %v166_v34 = vand.u32 4294901760, %v52_v24  ;;  %v5451_v35 = vand.u32 4294901760, %v4095_v15  ;;  %v5450_v36 = vand.u32 4294901760, %v4099_v21 }
  0x2e   :  { %v4120_v38 = vsub.f32 %v50_v13, %v160_v17  ;;  %v4122_v39 = vpack.c.bf16 %v214_v30, %v211_v29  ;;  %v4124_v40 = vsub.f32 %v67_v18, %v211_v29  ;;  %v5455_v41 = vand.u32 4294901760, %v4113_v31  ;;  %v56_v29 = vld [vmem:[#allocation5 + $0x48] sm:$0xff] }
  0x2f   :  { %v4127_v43 = vsub.f32 %v68_v19, %v214_v30  ;;  %v5453_v44 = vand.u32 4294901760, %v4115_v32  ;;  %v4130_v45 = vpack.c.bf16 %v166_v34, %v163_v33  ;;  %v4132_v46 = vsub.f32 %v51_v23, %v163_v33 }
  0x30   :  { %3391 = vmatpush3.bf16.msra.mxu0 %v4108_v27  ;;  %v378_v47 = vsub.f32 %v4113_v31, %v5455_v41  ;;  %v266_v48 = vsub.f32 %v4095_v15, %v5451_v35  ;;  %v273_v49 = vsub.f32 %v4099_v21, %v5450_v36  ;;  %v217_v50 = vand.u32 4294901760, %v69_v37  ;;  %v42_v41 = vld [vmem:[#allocation2 + $0x8] sm:$0xff] }
  0x31   :  { %3393 = vmatprep.subr.bf16.mxu0 %v4122_v39  ;;  %v385_v51 = vsub.f32 %v4115_v32, %v5453_v44  ;;  %v220_v52 = vand.u32 4294901760, %v70_v42  ;;  %v5448_v53 = vand.u32 4294901760, %v4104_v25  ;;  %v5446_v54 = vand.u32 4294901760, %v4106_v26 }
  0x32   :  { %v379_v57 = vand.u32 4294901760, %v378_v47  ;;  %v4150_v58 = vsub.f32 %v52_v24, %v166_v34  ;;  %v267_v59 = vand.u32 4294901760, %v266_v48  ;;  %v274_v60 = vand.u32 4294901760, %v273_v49 }
  0x33   :  { %v386_v61 = vand.u32 4294901760, %v385_v51  ;;  %v4152_v62 = vpack.c.bf16 %v220_v52, %v217_v50  ;;  %v4154_v63 = vsub.f32 %v69_v37, %v217_v50  ;;  %v392_v0 = vsub.f32 %v4104_v25, %v5448_v53 }
  0x34   :  { %3395 = vmatpush3.bf16.msra.mxu0 %v4130_v45  ;;  %v3418_v1 = vpack.c.bf16 %v274_v60, %v267_v59  ;;  %v399_v2 = vsub.f32 %v4106_v26, %v5446_v54  ;;  %v169_v3 = vand.u32 4294901760, %v53_v55  ;;  %v172_v4 = vand.u32 4294901760, %v54_v56  ;;  %v74_v59 = vld [vmem:[#allocation5 + $0xd8] sm:$0xff] }
  0x35   :  { %v3416_v7 = vpack.c.bf16 %v386_v61, %v379_v57  ;;  %3397 = vmatprep.subr.bf16.mxu0 %v4152_v62  ;;  %v393_v8 = vand.u32 4294901760, %v392_v0  ;;  %v5445_v9 = vand.u32 4294901760, %v4110_v28  ;;  %v5443_v10 = vand.u32 4294901760, %v4120_v38  ;;  %v73_v57 = vld [vmem:[#allocation5 + $0xd0] sm:$0xff]  ;;  %v78_v54 = vld [vmem:[#allocation5 + $0xf8] sm:$0xff] }
  0x36   :  { %v4166_v12 = vsub.f32 %v70_v42, %v220_v52  ;;  %v400_v13 = vand.u32 4294901760, %v399_v2  ;;  %v4168_v16 = vpack.c.bf16 %v172_v4, %v169_v3  ;;  %v4170_v17 = vsub.f32 %v53_v55, %v169_v3 }
  0x37   :  { %3417 = vmatprep.subr.bf16.mxu1 %v3416_v7  ;;  %v280_v18 = vsub.f32 %v4110_v28, %v5445_v9  ;;  %v287_v19 = vsub.f32 %v4120_v38, %v5443_v10  ;;  %v223_v23 = vand.u32 4294901760, %v71_v5  ;;  %v226_v24 = vand.u32 4294901760, %v72_v6  ;;  %v77_v9 = vld [vmem:[#allocation5 + $0xf0] sm:$0xff] }
  0x38   :  { %3419 = vmatpush3.bf16.msra.mxu1 %v3418_v1  ;;  %v3420_v30 = vpack.c.bf16 %v400_v13, %v393_v8  ;;  %3399 = vmatpush3.bf16.msra.mxu0 %v4168_v16  ;;  %v5441_v33 = vand.u32 4294901760, %v4124_v40  ;;  %v5440_v34 = vand.u32 4294901760, %v4127_v43  ;;  %v175_v37 = vand.u32 4294901760, %v55_v11  ;;  %v57_v1 = vld [vmem:[#allocation5 + $0x50] sm:$0xff] }
  0x39   :  { %v4181_v42 = vsub.f32 %v54_v56, %v172_v4  ;;  %v281_v47 = vand.u32 4294901760, %v280_v18  ;;  %v288_v48 = vand.u32 4294901760, %v287_v19  ;;  %v4183_v49 = vpack.c.bf16 %v226_v24, %v223_v23  ;;  %v58_v18 = vld [vmem:[#allocation5 + $0x58] sm:$0xff] }
  0x3a   :  { %3421 = vmatprep.subr.bf16.mxu1 %v3420_v30  ;;  %v4185_v50 = vsub.f32 %v71_v5, %v223_v23  ;;  %v406_v51 = vsub.f32 %v4124_v40, %v5441_v33  ;;  %v413_v52 = vsub.f32 %v4127_v43, %v5440_v34  ;;  %v178_v55 = vand.u32 4294901760, %v56_v29 }
  0x3b   :  { %v3422_v56 = vpack.c.bf16 %v288_v48, %v281_v47  ;;  %3401 = vmatprep.subr.bf16.mxu0 %v4183_v49  ;;  %v4194_v60 = vsub.f32 %v72_v6, %v226_v24  ;;  %v5438_v61 = vand.u32 4294901760, %v4132_v46  ;;  %v5436_v0 = vand.u32 4294901760, %v4150_v58 }
  0x3c   :  { %v407_v2 = vand.u32 4294901760, %v406_v51  ;;  %v414_v3 = vand.u32 4294901760, %v413_v52  ;;  %v4198_v4 = vpack.c.bf16 %v178_v55, %v175_v37  ;;  %v4200_v5 = vsub.f32 %v55_v11, %v175_v37 }
  0x3d   :  { %3423 = vmatpush3.bf16.msra.mxu1 %v3422_v56  ;;  %v294_v7 = vsub.f32 %v4132_v46, %v5438_v61  ;;  %v301_v6 = vsub.f32 %v4150_v58, %v5436_v0  ;;  %v229_v8 = vand.u32 4294901760, %v73_v57  ;;  %v232_v13 = vand.u32 4294901760, %v74_v59  ;;  %v76_v0 = vld [vmem:[#allocation5 + $0xe8] sm:$0xff] }
  0x3e   :  { %v3424_v19 = vpack.c.bf16 %v414_v3, %v407_v2  ;;  %3403 = vmatpush3.bf16.msra.mxu0 %v4198_v4  ;;  %v5437_v23 = vand.u32 4294901760, %v4154_v63  ;;  %v5439_v11 = vand.u32 4294901760, %v4166_v12  ;;  %v181_v24 = vand.u32 4294901760, %v57_v1  ;;  %v75_v3 = vld [vmem:[#allocation5 + $0xe0] sm:$0xff] }
  0x3f   :  { %v4211_v30 = vsub.f32 %v56_v29, %v178_v55  ;;  %v295_v37 = vand.u32 4294901760, %v294_v7  ;;  %v302_v47 = vand.u32 4294901760, %v301_v6  ;;  %v4213_v48 = vpack.c.bf16 %v232_v13, %v229_v8  ;;  %v59_v6 = vld [vmem:[#allocation5 + $0x60] sm:$0xff] }
  0x40   :  { %3425 = vmatprep.subr.bf16.mxu1 %v3424_v19  ;;  %v4215_v51 = vsub.f32 %v73_v57, %v229_v8  ;;  %v420_v52 = vsub.f32 %v4154_v63, %v5437_v23  ;;  %v427_v56 = vsub.f32 %v4166_v12, %v5439_v11  ;;  %v184_v2 = vand.u32 4294901760, %v58_v18  ;;  %v60_v11 = vld [vmem:[#allocation5 + $0x68] sm:$0xff] }
  0x41   :  { %v3426_v29 = vpack.c.bf16 %v302_v47, %v295_v37  ;;  %3405 = vmatprep.subr.bf16.mxu0 %v4213_v48  ;;  %v4224_v55 = vsub.f32 %v74_v59, %v232_v13  ;;  %v5442_v7 = vand.u32 4294901760, %v4170_v17  ;;  %v5444_v57 = vand.u32 4294901760, %v4181_v42 }
  0x42   :  { %v421_v8 = vand.u32 4294901760, %v420_v52  ;;  %v428_v19 = vand.u32 4294901760, %v427_v56  ;;  %v4228_v23 = vpack.c.bf16 %v184_v2, %v181_v24  ;;  %v4230_v61 = vsub.f32 %v57_v1, %v181_v24 }
  0x43   :  { %3427 = vmatpush3.bf16.msra.mxu1 %v3426_v29  ;;  %v308_v37 = vsub.f32 %v4170_v17, %v5442_v7  ;;  %v315_v59 = vsub.f32 %v4181_v42, %v5444_v57  ;;  %v235_v13 = vand.u32 4294901760, %v75_v3  ;;  %v238_v47 = vand.u32 4294901760, %v76_v0 }
  0x44   :  { %5572 = vst [vmem:[#allocation11_spill] sm:$0xff] %v4228_v23  ;;  %v3428_v34 = vpack.c.bf16 %v428_v19, %v421_v8  ;;  %3407 = vmatpush3.bf16.msra.mxu0 %v4228_v23  ;;  %v5447_v52 = vand.u32 4294901760, %v4185_v50  ;;  %v5449_v1 = vand.u32 4294901760, %v4194_v60  ;;  %v187_v24 = vand.u32 4294901760, %v59_v6 }
  0x45   :  { %v4241_v56 = vsub.f32 %v58_v18, %v184_v2  ;;  %v309_v29 = vand.u32 4294901760, %v308_v37  ;;  %v316_v33 = vand.u32 4294901760, %v315_v59  ;;  %v4243_v7 = vpack.c.bf16 %v238_v47, %v235_v13  ;;  %v61_v37 = vld [vmem:[#allocation5 + $0x70] sm:$0xff] }
  0x46   :  { %3429 = vmatprep.subr.bf16.mxu1 %v3428_v34  ;;  %v4245_v10 = vsub.f32 %v75_v3, %v235_v13  ;;  %v434_v8 = vsub.f32 %v4185_v50, %v5447_v52  ;;  %v441_v19 = vsub.f32 %v4194_v60, %v5449_v1  ;;  %v190_v57 = vand.u32 4294901760, %v60_v11  ;;  %v62_v1 = vld [vmem:[#allocation5 + $0x78] sm:$0xff] }
  0x47   :  { %5573 = vst [vmem:[#allocation12_spill] sm:$0xff] %v4243_v7  ;;  %v3430_v18 = vpack.c.bf16 %v316_v33, %v309_v29  ;;  %3409 = vmatprep.subr.bf16.mxu0 %v4243_v7  ;;  %v4254_v2 = vsub.f32 %v76_v0, %v238_v47  ;;  %v5452_v34 = vand.u32 4294901760, %v4200_v5  ;;  %v5454_v3 = vand.u32 4294901760, %v4211_v30 }
  0x48   :  { %v435_v59 = vand.u32 4294901760, %v434_v8  ;;  %v442_v13 = vand.u32 4294901760, %v441_v19  ;;  %v4258_v52 = vpack.c.bf16 %v190_v57, %v187_v24  ;;  %v4260_v53 = vsub.f32 %v59_v6, %v187_v24 }
  0x49   :  { %3431 = vmatpush3.bf16.msra.mxu1 %v3430_v18  ;;  %v322_v33 = vsub.f32 %v4200_v5, %v5452_v34  ;;  %v329_v0 = vsub.f32 %v4211_v30, %v5454_v3  ;;  %v241_v47 = vand.u32 4294901760, %v77_v9  ;;  %v244_v29 = vand.u32 4294901760, %v78_v54 }
  0x4a   :  { %5574 = vst [vmem:[#allocation13_spill] sm:$0xff] %v4258_v52  ;;  %v3432_v36 = vpack.c.bf16 %v442_v13, %v435_v59  ;;  %3411 = vmatpush3.bf16.msra.mxu0 %v4258_v52  ;;  %v5458_v8 = vand.u32 4294901760, %v4215_v51  ;;  %v5459_v6 = vand.u32 4294901760, %v4224_v55  ;;  %v193_v24 = vand.u32 4294901760, %v61_v37 }
  0x4b   :  { %v4271_v19 = vsub.f32 %v60_v11, %v190_v57  ;;  %v323_v18 = vand.u32 4294901760, %v322_v33  ;;  %v330_v35 = vand.u32 4294901760, %v329_v0  ;;  %v4273_v34 = vpack.c.bf16 %v244_v29, %v241_v47 }
  0x4c   :  { %3433 = vmatprep.subr.bf16.mxu1 %v3432_v36  ;;  %v4275_v44 = vsub.f32 %v77_v9, %v241_v47  ;;  %v448_v59 = vsub.f32 %v4215_v51, %v5458_v8  ;;  %v455_v13 = vsub.f32 %v4224_v55, %v5459_v6  ;;  %v196_v3 = vand.u32 4294901760, %v62_v1  ;;  %v41_v9 = vld [vmem:[#allocation2] sm:$0xff] }
  0x4d   :  { %5575 = vst [vmem:[#allocation14_spill] sm:$0xff] %v4273_v34  ;;  %v3434_v52 = vpack.c.bf16 %v330_v35, %v323_v18  ;;  %3413 = vmatprep.subr.bf16.mxu0 %v4273_v34  ;;  %v4284_v11 = vsub.f32 %v78_v54, %v244_v29  ;;  %v5460_v57 = vand.u32 4294901760, %v4230_v61  ;;  %v5461_v36 = vand.u32 4294901760, %v4241_v56 }
  0x4e   :  { %v449_v33 = vand.u32 4294901760, %v448_v59  ;;  %v456_v0 = vand.u32 4294901760, %v455_v13  ;;  %v4288_v47 = vpack.c.bf16 %v196_v3, %v193_v24  ;;  %v4290_v8 = vsub.f32 %v61_v37, %v193_v24 }
  0x4f   :  { %3435 = vmatpush3.bf16.msra.mxu1 %v3434_v52  ;;  %v336_v35 = vsub.f32 %v4230_v61, %v5460_v57  ;;  %v343_v54 = vsub.f32 %v4241_v56, %v5461_v36  ;;  %v4298_v29 = vand.u32 4294901760, %v42_v41  ;;  %v5464_v18 = vand.u32 4294901760, %v4245_v10 }
  0x50   :  { %5576 = vst [vmem:[#allocation15_spill] sm:$0xff] %v4288_v47  ;;  %v3436_v6 = vpack.c.bf16 %v456_v0, %v449_v33  ;;  %3415 = vmatpush3.bf16.msra.mxu0 %v4288_v47  ;;  %v5470_v59 = vand.u32 4294901760, %v4254_v2  ;;  %v3448_v52 = vpack.c.bf16 %v4115_v32, %v4113_v31  ;;  %v4305_v37 = vand.u32 4294901760, %v41_v9 }
  0x51   :  { %5577 = vst [vmem:[#allocation16_spill] sm:$0xff] %v4298_v29  ;;  %v337_v24 = vand.u32 4294901760, %v336_v35  ;;  %v344_v13 = vand.u32 4294901760, %v343_v54  ;;  %v4308_v57 = vsub.f32 %v42_v41, %v4298_v29  ;;  %v462_v36 = vsub.f32 %v4245_v10, %v5464_v18  ;;  %487 = vmatprep.mubr.f32.mxu1 %v4298_v29 }
  0x52   :  { %3437 = vmatprep.subr.bf16.mxu1 %v3436_v6  ;;  %v469_v33 = vsub.f32 %v4254_v2, %v5470_v59  ;;  %3449 = vmatprep.subr.bf16.mxu0 %v3448_v52  ;;  %v4318_v0 = vsub.f32 %v41_v9, %v4305_v37  ;;  %v5469_v35 = vand.u32 4294901760, %v4260_v53  ;;  %v5471_v41 = vand.u32 4294901760, %v4271_v19 }
  0x53   :  { %v4322_v54 = vsub.f32 %v62_v1, %v196_v3  ;;  %v3438_v47 = vpack.c.bf16 %v344_v13, %v337_v24  ;;  %v5472_v18 = vand.u32 4294901760, %v4308_v57  ;;  %v463_v34 = vand.u32 4294901760, %v462_v36 }
  0x54   :  { %v470_v29 = vand.u32 4294901760, %v469_v33  ;;  %v254_v6 = vand.u32 4294901760, %v4318_v0  ;;  %v350_v52 = vsub.f32 %v4260_v53, %v5469_v35  ;;  %v357_v9 = vsub.f32 %v4271_v19, %v5471_v41 }
  0x55   :  { %3439 = vmatpush3.bf16.msra.mxu1 %v3438_v47  ;;  %v249_v1 = vsub.f32 %v4308_v57, %v5472_v18  ;;  %v3450_v3 = vpack.c.bf16 %v4099_v21, %v4095_v15  ;;  %v5477_v36 = vand.u32 4294901760, %v4275_v44  ;;  %v5480_v24 = vand.u32 4294901760, %v4284_v11 }
  0x56   :  { %v3440_v13 = vpack.c.bf16 %v470_v29, %v463_v34  ;;  %v255_v33 = vsub.f32 %v4318_v0, %v254_v6  ;;  %v351_v35 = vand.u32 4294901760, %v350_v52  ;;  %v358_v59 = vand.u32 4294901760, %v357_v9 }
  0x57   :  { %v250_v41 = vand.u32 4294901760, %v249_v1  ;;  %v476_v47 = vsub.f32 %v4275_v44, %v5477_v36  ;;  %v483_v18 = vsub.f32 %v4284_v11, %v5480_v24  ;;  %v5479_v7 = vand.u32 4294901760, %v4290_v8 }
  0x58   :  { %3441 = vmatprep.subr.bf16.mxu1 %v3440_v13  ;;  %v256_v23 = vand.u32 4294901760, %v255_v33  ;;  %v3442_v34 = vpack.c.bf16 %v358_v59, %v351_v35  ;;  %v3452_v29 = vpack.c.bf16 %v4106_v26, %v4104_v25  ;;  %v5478_v52 = vand.u32 4294901760, %v4322_v54 }
  0x59   :  { %251 = vmatprep.mubr.f32.mxu0 %v250_v41  ;;  %v477_v9 = vand.u32 4294901760, %v476_v47  ;;  %v484_v1 = vand.u32 4294901760, %v483_v18  ;;  %v364_v36 = vsub.f32 %v4290_v8, %v5479_v7  ;;  %v3454_v33 = vpack.c.bf16 %v4120_v38, %v4110_v28 }
  0x5a   :  { %257 = vmatmul.mubr.f32.vlgmr.msra.gmra.mrb[0].mxu0 %v256_v23  ;;  %3443 = vmatpush3.bf16.msra.mxu1 %v3442_v34  ;;  %v371_v13 = vsub.f32 %v4322_v54, %v5478_v52  ;;  %v3456_v41 = vpack.c.bf16 %v4127_v43, %v4124_v40  ;;  %v3458_v23 = vpack.c.bf16 %v4150_v58, %v4132_v46  ;;  %v5579_v34 = vand.u32 4294901760, %v4115_v32 }
  0x5b   :  { %3451 = vmatpush3.bf16.msra.mxu0 %v3450_v3  ;;  %v3444_v59 = vpack.c.bf16 %v484_v1, %v477_v9  ;;  %v365_v35 = vand.u32 4294901760, %v364_v36  ;;  %624 = vmatprep.mubr.f32.mxu0 %v4308_v57  ;;  %v3460_v47 = vpack.c.bf16 %v4166_v12, %v4154_v63  ;;  %v5578_v36 = vand.u32 4294901760, %v4113_v31 }
  0x5c   :  { %3453 = vmatprep.subr.bf16.mxu0 %v3452_v29  ;;  %v372_v18 = vand.u32 4294901760, %v371_v13  ;;  %v5580_v1 = vand.u32 4294901760, %v4095_v15  ;;  %v5581_v29 = vand.u32 4294901760, %v4099_v21  ;;  %v5582_v52 = vand.u32 4294901760, %v4104_v25 }
  0x5d   :  { %3445 = vmatprep.subr.bf16.mxu1 %v3444_v59  ;;  %v3512_v9 = vpack.c.bf16 %v5579_v34, %v5578_v36  ;;  %v5583_v59 = vand.u32 4294901760, %v4106_v26  ;;  %v5584_v24 = vand.u32 4294901760, %v4110_v28  ;;  %v5586_v31 = vand.u32 4294901760, %v4124_v40 }
  0x5e   :  { %v3446_v3 = vpack.c.bf16 %v372_v18, %v365_v35  ;;  %v3514_v13 = vpack.c.bf16 %v5581_v29, %v5580_v1  ;;  %v5585_v35 = vand.u32 4294901760, %v4120_v38  ;;  %v5587_v32 = vand.u32 4294901760, %v4127_v43  ;;  %v5601_v29 = vld [vmem:[#allocation16_spill] sm:$0xff] }
  0x5f   :  { %v3516_v7 = vpack.c.bf16 %v5583_v59, %v5582_v52  ;;  %3455 = vmatpush3.bf16.msra.mxu0 %v3454_v33  ;;  %v5588_v15 = vand.u32 4294901760, %v4132_v46  ;;  %v5589_v21 = vand.u32 4294901760, %v4150_v58  ;;  %v5590_v25 = vand.u32 4294901760, %v4154_v63  ;;  %v96_v59 = vld [vmem:[#allocation5 + $0x188] sm:$0xff] }
  0x60   :  { %v3518_v18 = vpack.c.bf16 %v5585_v35, %v5584_v24  ;;  %v3520_v36 = vpack.c.bf16 %v5587_v32, %v5586_v31  ;;  %v5591_v26 = vand.u32 4294901760, %v4166_v12  ;;  %3447 = vmatpush3.bf16.msra.mxu1 %v3446_v3  ;;  %3457 = vmatprep.subr.bf16.mxu0 %v3456_v41  ;;  %v5592_v28 = vand.u32 4294901760, %v4170_v17  ;;  %v79_v35 = vld [vmem:[#allocation5 + $0x100] sm:$0xff]  ;;  %v80_v31 = vld [vmem:[#allocation5 + $0x108] sm:$0xff]  ;;  %v5602_v32 = vld [vmem:[#allocation13_spill] sm:$0xff] }
  0x61   :  { %v4391_v34 = vpack.c.bf16 %v5589_v21, %v5588_v15  ;;  %v5593_v38 = vand.u32 4294901760, %v4181_v42  ;;  %v5594_v43 = vand.u32 4294901760, %v4185_v50  ;;  %v5595_v46 = vand.u32 4294901760, %v4194_v60  ;;  %3481 = vmatprep.subr.bf16.mxu1 %v4093_v14  ;;  %v5603_v15 = vld [vmem:[#allocation14_spill] sm:$0xff] }
  0x62   :  { %v4397_v52 = vpack.c.bf16 %v5591_v26, %v5590_v25  ;;  %v5596_v63 = vand.u32 4294901760, %v4200_v5  ;;  %v5597_v12 = vand.u32 4294901760, %v4211_v30  ;;  %v3462_v33 = vpack.c.bf16 %v4181_v42, %v4170_v17 }
  0x63   :  { %v4403_v40 = vpack.c.bf16 %v5593_v38, %v5592_v28  ;;  %v4409_v58 = vpack.c.bf16 %v5595_v46, %v5594_v43  ;;  %489 = vmatmul.mubr.f32.vlgmr.msra.gmra.mrb[0].mxu1 %v4305_v37  ;;  %3459 = vmatpush3.bf16.msra.mxu0 %v3458_v23  ;;  %v3464_v41 = vpack.c.bf16 %v4194_v60, %v4185_v50  ;;  %v5598_v3 = vand.u32 4294901760, %v4308_v57  ;;  %v5599_v57 = vld [vmem:[#allocation11_spill] sm:$0xff]  ;;  %v5600_v23 = vld [vmem:[#allocation12_spill] sm:$0xff] }
  0x64   :  { %v4415_v24 = vpack.c.bf16 %v5597_v12, %v5596_v63  ;;  %3483 = vmatpush3.bf16.msra.mxu1 %v4097_v20  ;;  %3461 = vmatprep.subr.bf16.mxu0 %v3460_v47  ;;  %v3466_v1 = vpack.c.bf16 %v4211_v30, %v4200_v5  ;;  %v3468_v17 = vpack.c.bf16 %v4224_v55, %v4215_v51  ;;  %v95_v47 = vld [vmem:[#allocation5 + $0x180] sm:$0xff]  ;;  %v1064_v25 = vand.u32 4294901760, %v96_v59  ;;  %v5604_v28 = vld [vmem:[#allocation15_spill] sm:$0xff]  ;;  %v97_v38 = vld [vmem:[#allocation5 + $0x190] sm:$0xff] }
  0x65   :  { %3485 = vmatprep.subr.bf16.mxu1 %v4101_v22  ;;  %731 = vmatprep.mubr.f32.mxu1 %v5598_v3  ;;  %v3470_v42 = vpack.c.bf16 %v4241_v56, %v4230_v61  ;;  %v3472_v50 = vpack.c.bf16 %v4254_v2, %v4245_v10  ;;  %v3474_v60 = vpack.c.bf16 %v4271_v19, %v4260_v53  ;;  %v1061_v21 = vand.u32 4294901760, %v95_v47  ;;  %v81_v46 = vld [vmem:[#allocation5 + $0x110] sm:$0xff]  ;;  %v82_v63 = vld [vmem:[#allocation5 + $0x118] sm:$0xff] }
  0x66   :  { %v3476_v5 = vpack.c.bf16 %v4284_v11, %v4275_v44  ;;  %v3478_v30 = vpack.c.bf16 %v4322_v54, %v4290_v8  ;;  %v1013_v26 = vand.u32 4294901760, %v79_v35  ;;  %v4459_v12 = vsub.f32 %v96_v59, %v1064_v25 }
  0x67   :  { %3463 = vmatpush3.bf16.msra.mxu0 %v3462_v33  ;;  %v4457_v43 = vsub.f32 %v95_v47, %v1061_v21 }
  0x68   :  { %3487 = vmatpush3.bf16.msra.mxu1 %v4108_v27  ;;  %3465 = vmatprep.subr.bf16.mxu0 %v3464_v41  ;;  %v1067_v41 = vand.u32 4294901760, %v97_v38  ;;  %v5490_v59 = vand.u32 4294901760, %v4459_v12 }
  0x69   :  { %3489 = vmatprep.subr.bf16.mxu1 %v4122_v39 }
  0x6b   :  { %3467 = vmatpush3.bf16.msra.mxu0 %v3466_v1  ;;  %v5607_v1 = vand.u32 4294901760, %v4230_v61 }
  0x6c   :  { %3491 = vmatpush3.bf16.msra.mxu1 %v4130_v45  ;;  %3469 = vmatprep.subr.bf16.mxu0 %v3468_v17  ;;  %v5608_v17 = vand.u32 4294901760, %v4241_v56  ;;  %v5613_v56 = vand.u32 4294901760, %v4275_v44  ;;  %v83_v44 = vld [vmem:[#allocation5 + $0x120] sm:$0xff] }
  0x6d   :  { %3493 = vmatprep.subr.bf16.mxu1 %v4152_v62 }
  0x6f   :  { %3471 = vmatpush3.bf16.msra.mxu0 %v3470_v42  ;;  %v3534_v42 = vpack.c.bf16 %v5608_v17, %v5607_v1  ;;  %v101_v17 = vld [vmem:[#allocation5 + $0x1b0] sm:$0xff] }
  0x70   :  { %3495 = vmatpush3.bf16.msra.mxu1 %v4168_v16  ;;  %3473 = vmatprep.subr.bf16.mxu0 %v3472_v50  ;;  %v99_v50 = vld [vmem:[#allocation5 + $0x1a0] sm:$0xff] }
  0x71   :  { %3497 = vmatprep.subr.bf16.mxu1 %v4183_v49 }
  0x73   :  { %3475 = vmatpush3.bf16.msra.mxu0 %v3474_v60  ;;  %v100_v60 = vld [vmem:[#allocation5 + $0x1a8] sm:$0xff] }
  0x74   :  { %3499 = vmatpush3.bf16.msra.mxu1 %v4198_v4  ;;  %3477 = vmatprep.subr.bf16.mxu0 %v3476_v5 }
  0x75   :  { %3501 = vmatprep.subr.bf16.mxu1 %v4213_v48 }
  0x77   :  { %3479 = vmatpush3.bf16.msra.mxu0 %v3478_v30  ;;  %v5616_v30 = vand.u32 4294901760, %v4322_v54 }
  0x78   :  { %3503 = vmatpush3.bf16.msra.mxu1 %v5599_v57  ;;  %3513 = vmatprep.subr.bf16.mxu0 %v3512_v9  ;;  %v1016_v9 = vand.u32 4294901760, %v80_v31 }
  0x79   :  { %3505 = vmatprep.subr.bf16.mxu1 %v5600_v23 }
  0x7a   :  { %627 = vmatmul.mubr.f32.vlgmr.msra.gmra.mrb[2].mxu0 %v4318_v0  ;;  %v4463_v33 = vsub.f32 %v80_v31, %v1016_v9  ;;  %v5609_v0 = vand.u32 4294901760, %v4245_v10  ;;  %v5614_v10 = vand.u32 4294901760, %v4284_v11 }
  0x7b   :  { %3515 = vmatpush3.bf16.msra.mxu0 %v3514_v13  ;;  %901 = vmatprep.mubr.f32.mxu0 %v5601_v29  ;;  %v98_v13 = vld [vmem:[#allocation5 + $0x198] sm:$0xff] }
  0x7c   :  { %3507 = vmatpush3.bf16.msra.mxu1 %v5602_v32  ;;  %3517 = vmatprep.subr.bf16.mxu0 %v3516_v7  ;;  %v4461_v7 = vsub.f32 %v79_v35, %v1013_v26  ;;  %v1070_v3 = vand.u32 4294901760, %v98_v13  ;;  %v4495_v5 = vpack.c.bf16 %v5614_v10, %v5613_v56  ;;  %v84_v35 = vld [vmem:[#allocation5 + $0x128] sm:$0xff]  ;;  %v5481_v31 = vand.u32 4294901760, %v4463_v33 }
  0x7d   :  { %3509 = vmatprep.subr.bf16.mxu1 %v5603_v15 }
  0x7e   :  { %v5487_v11 = vand.u32 4294901760, %v4461_v7  ;;  %v4513_v54 = vpack.c.bf16 %v1070_v3, %v1067_v41 }
  0x7f   :  { %3519 = vmatpush3.bf16.msra.mxu0 %v3518_v18  ;;  %v5605_v18 = vand.u32 4294901760, %v4215_v51  ;;  %v1019_v51 = vand.u32 4294901760, %v81_v46 }
  0x80   :  { %3511 = vmatpush3.bf16.msra.mxu1 %v5604_v28  ;;  %3521 = vmatprep.subr.bf16.mxu0 %v3520_v36  ;;  %v5606_v36 = vand.u32 4294901760, %v4224_v55  ;;  %v1022_v55 = vand.u32 4294901760, %v82_v63  ;;  %5618 = vst [vmem:[#allocation12_spill] sm:$0xff] %v4513_v54 }
  0x81   :  { %3545 = vmatprep.subr.bf16.mxu1 %v4093_v14 }
  0x82   :  { %v3532_v14 = vpack.c.bf16 %v5606_v36, %v5605_v18  ;;  %v1076_v18 = vand.u32 4294901760, %v100_v60  ;;  %v4521_v36 = vpack.c.bf16 %v1022_v55, %v1019_v51 }
  0x83   :  { %735 = vmatmul.mubr.f32.vlgmr.msra.gmra.mrb[2].mxu1 %v254_v6  ;;  %3523 = vmatpush3.bf16.msra.mxu0 %v4391_v34  ;;  %v5610_v6 = vand.u32 4294901760, %v4254_v2  ;;  %v5615_v2 = vand.u32 4294901760, %v4290_v8  ;;  %v4511_v8 = vpack.c.bf16 %v1016_v9, %v1013_v26  ;;  %v1025_v9 = vand.u32 4294901760, %v83_v44 }
  0x84   :  { %3547 = vmatpush3.bf16.msra.mxu1 %v4097_v20  ;;  %3525 = vmatprep.subr.bf16.mxu0 %v4397_v52  ;;  %v5611_v20 = vand.u32 4294901760, %v4260_v53  ;;  %v5612_v52 = vand.u32 4294901760, %v4271_v19  ;;  %v44_v53 = vld [vmem:[#allocation2 + $0x18] sm:$0xff]  ;;  %v4505_v19 = vpack.c.bf16 %v1064_v25, %v1061_v21  ;;  %v4517_v21 = vsub.f32 %v97_v38, %v1067_v41  ;;  %5619 = vst [vmem:[#allocation16_spill] sm:$0xff] %v4521_v36 }
  0x85   :  { %v4482_v34 = vpack.c.bf16 %v5610_v6, %v5609_v0  ;;  %3549 = vmatprep.subr.bf16.mxu1 %v4101_v22  ;;  %v4501_v47 = vpack.c.bf16 %v5616_v30, %v5615_v2  ;;  %1005 = vmatprep.mubr.f32.mxu1 %v5601_v29  ;;  %v5491_v22 = vand.u32 4294901760, %v4457_v43  ;;  %5617 = vst [vmem:[#allocation11_spill] sm:$0xff] %v4511_v8  ;;  %v1073_v29 = vand.u32 4294901760, %v99_v50 }
  0x86   :  { %v4489_v61 = vpack.c.bf16 %v5612_v52, %v5611_v20  ;;  %v4519_v25 = vsub.f32 %v98_v13, %v1070_v3  ;;  %v4523_v1 = vand.u32 4294901760, %v44_v53  ;;  %v4531_v38 = vsub.f32 %v82_v63, %v1022_v55  ;;  %v85_v52 = vld [vmem:[#allocation5 + $0x130] sm:$0xff] }
  0x87   :  { %3527 = vmatpush3.bf16.msra.mxu0 %v4403_v40  ;;  %v4526_v40 = vsub.f32 %v81_v46, %v1019_v51  ;;  %v1240_v26 = vsub.f32 %v4457_v43, %v5491_v22  ;;  %v1247_v13 = vsub.f32 %v4459_v12, %v5490_v59  ;;  %v1135_v46 = vsub.f32 %v4463_v33, %v5481_v31  ;;  %v103_v31 = vld [vmem:[#allocation5 + $0x1c0] sm:$0xff]  ;;  %v90_v22 = vld [vmem:[#allocation5 + $0x158] sm:$0xff] }
  0x88   :  { %3551 = vmatpush3.bf16.msra.mxu1 %v4108_v27  ;;  %3529 = vmatprep.subr.bf16.mxu0 %v4409_v58  ;;  %5620 = vst [vmem:[#allocation13_spill] sm:$0xff] %v4523_v1  ;;  %v1028_v27 = vand.u32 4294901760, %v84_v35  ;;  %v102_v58 = vld [vmem:[#allocation5 + $0x1b8] sm:$0xff]  ;;  %v4543_v41 = vpack.c.bf16 %v1076_v18, %v1073_v29  ;;  %v4545_v3 = vsub.f32 %v99_v50, %v1073_v29  ;;  %v1079_v6 = vand.u32 4294901760, %v101_v17 }
  0x89   :  { %3553 = vmatprep.subr.bf16.mxu1 %v4122_v39  ;;  %v1128_v39 = vsub.f32 %v4461_v7, %v5487_v11  ;;  %v4547_v63 = vsub.f32 %v100_v60, %v1076_v18  ;;  %v4550_v0 = vsub.f32 %v44_v53, %v4523_v1  ;;  %v1082_v51 = vand.u32 4294901760, %v102_v58 }
  0x8a   :  { %5621 = vst [vmem:[#allocation14_spill] sm:$0xff] %v4543_v41  ;;  %v5485_v55 = vand.u32 4294901760, %v4517_v21  ;;  %v5482_v20 = vand.u32 4294901760, %v4519_v25  ;;  %v1241_v50 = vand.u32 4294901760, %v1240_v26  ;;  %v4556_v56 = vpack.c.bf16 %v1028_v27, %v1025_v9 }
  0x8b   :  { %3531 = vmatpush3.bf16.msra.mxu0 %v4415_v24  ;;  %v86_v24 = vld [vmem:[#allocation5 + $0x138] sm:$0xff]  ;;  %v4558_v60 = vsub.f32 %v83_v44, %v1025_v9  ;;  %v4560_v10 = vsub.f32 %v84_v35, %v1028_v27  ;;  %v1248_v2 = vand.u32 4294901760, %v1247_v13  ;;  %v5484_v30 = vand.u32 4294901760, %v4526_v40  ;;  %v104_v27 = vld [vmem:[#allocation5 + $0x1c8] sm:$0xff] }
  0x8c   :  { %3555 = vmatpush3.bf16.msra.mxu1 %v4130_v45  ;;  %3533 = vmatprep.subr.bf16.mxu0 %v3532_v14  ;;  %5622 = vst [vmem:[#allocation15_spill] sm:$0xff] %v4556_v56  ;;  %v1129_v45 = vand.u32 4294901760, %v1128_v39  ;;  %v1136_v14 = vand.u32 4294901760, %v1135_v46  ;;  %v1031_v53 = vand.u32 4294901760, %v85_v52  ;;  %v1034_v29 = vand.u32 4294901760, %v86_v24 }
  0x8d   :  { %3557 = vmatprep.subr.bf16.mxu1 %v4152_v62  ;;  %v5483_v18 = vand.u32 4294901760, %v4531_v38  ;;  %v5494_v62 = vand.u32 4294901760, %v4550_v0  ;;  %v4567_v44 = vpack.c.bf16 %v1082_v51, %v1079_v6  ;;  %v1254_v35 = vsub.f32 %v4517_v21, %v5485_v55 }
  0x8e   :  { %v4576_v26 = vsub.f32 %v101_v17, %v1079_v6  ;;  %v4578_v9 = vsub.f32 %v102_v58, %v1082_v51  ;;  %v4582_v13 = vpack.c.bf16 %v1248_v2, %v1241_v50  ;;  %v4584_v39 = vpack.c.bf16 %v1136_v14, %v1129_v45 }
  0x8f   :  { %3535 = vmatpush3.bf16.msra.mxu0 %v3534_v42  ;;  %5623 = vst [vmem:[#allocation17_spill] sm:$0xff] %v4567_v44  ;;  %v1261_v42 = vsub.f32 %v4519_v25, %v5482_v20  ;;  %v1142_v46 = vsub.f32 %v4526_v40, %v5484_v30  ;;  %v1085_v20 = vand.u32 4294901760, %v103_v31  ;;  %v1149_v17 = vsub.f32 %v4531_v38, %v5483_v18 }
  0x90   :  { %3559 = vmatpush3.bf16.msra.mxu1 %v4168_v16  ;;  %3537 = vmatprep.subr.bf16.mxu0 %v4482_v34  ;;  %v5486_v16 = vand.u32 4294901760, %v4545_v3  ;;  %v5489_v34 = vand.u32 4294901760, %v4547_v63  ;;  %v5488_v58 = vand.u32 4294901760, %v4558_v60  ;;  %v1111_v6 = vsub.f32 %v4550_v0, %v5494_v62 }
  0x91   :  { %3561 = vmatprep.subr.bf16.mxu1 %v4183_v49  ;;  %v4590_v49 = vpack.c.bf16 %v1034_v29, %v1031_v53  ;;  %v1255_v51 = vand.u32 4294901760, %v1254_v35  ;;  %v1262_v50 = vand.u32 4294901760, %v1261_v42  ;;  %v1088_v2 = vand.u32 4294901760, %v104_v27  ;;  %v88_v42 = vld [vmem:[#allocation5 + $0x148] sm:$0xff] }
  0x92   :  { %v5493_v45 = vand.u32 4294901760, %v4560_v10  ;;  %v4603_v14 = vsub.f32 %v85_v52, %v1031_v53  ;;  %v4605_v18 = vsub.f32 %v86_v24, %v1034_v29  ;;  %v1268_v30 = vsub.f32 %v4545_v3, %v5486_v16  ;;  %v105_v29 = vld [vmem:[#allocation5 + $0x1d0] sm:$0xff]  ;;  %v106_v16 = vld [vmem:[#allocation5 + $0x1d8] sm:$0xff] }
  0x93   :  { %3539 = vmatpush3.bf16.msra.mxu0 %v4489_v61  ;;  %5624 = vst [vmem:[#allocation18_spill] sm:$0xff] %v4590_v49  ;;  %v87_v61 = vld [vmem:[#allocation5 + $0x140] sm:$0xff]  ;;  %v4613_v35 = vsub.f32 %v103_v31, %v1085_v20  ;;  %v5492_v55 = vand.u32 4294901760, %v4576_v26  ;;  %v1150_v52 = vand.u32 4294901760, %v1149_v17  ;;  %v1156_v53 = vsub.f32 %v4558_v60, %v5488_v58 }
  0x94   :  { %3563 = vmatpush3.bf16.msra.mxu1 %v4198_v4  ;;  %3541 = vmatprep.subr.bf16.mxu0 %v4495_v5  ;;  %v1275_v4 = vsub.f32 %v4547_v63, %v5489_v34  ;;  %v1143_v5 = vand.u32 4294901760, %v1142_v46  ;;  %v1037_v24 = vand.u32 4294901760, %v87_v61  ;;  %v1112_v11 = vand.u32 4294901760, %v1111_v6  ;;  %v89_v6 = vld [vmem:[#allocation5 + $0x150] sm:$0xff] }
  0x95   :  { %3565 = vmatprep.subr.bf16.mxu1 %v4213_v48  ;;  %v5495_v48 = vand.u32 4294901760, %v4578_v9  ;;  %v4623_v31 = vpack.c.bf16 %v1262_v50, %v1255_v51  ;;  %v4625_v46 = vpack.c.bf16 %v1088_v2, %v1085_v20  ;;  %v4631_v17 = vsub.f32 %v104_v27, %v1088_v2 }
  0x96   :  { %v1269_v58 = vand.u32 4294901760, %v1268_v30  ;;  %v1276_v34 = vand.u32 4294901760, %v1275_v4  ;;  %v1040_v59 = vand.u32 4294901760, %v88_v42  ;;  %v1094_v51 = vand.u32 4294901760, %v106_v16 }
  0x97   :  { %3543 = vmatpush3.bf16.msra.mxu0 %v4501_v47  ;;  %5625 = vst [vmem:[#allocation19_spill] sm:$0xff] %v4625_v46  ;;  %v1163_v47 = vsub.f32 %v4560_v10, %v5493_v45  ;;  %v1282_v20 = vsub.f32 %v4576_v26, %v5492_v55  ;;  %v1289_v50 = vsub.f32 %v4578_v9, %v5495_v48  ;;  %v1157_v27 = vand.u32 4294901760, %v1156_v53  ;;  %v107_v48 = vld [vmem:[#allocation5 + $0x1e0] sm:$0xff]  ;;  %v108_v53 = vld [vmem:[#allocation5 + $0x1e8] sm:$0xff] }
  0x98   :  { %3567 = vmatpush3.bf16.msra.mxu1 %v5599_v57  ;;  %3577 = vmatprep.subr.bf16.mxu0 %v4505_v19  ;;  %v1091_v57 = vand.u32 4294901760, %v105_v29  ;;  %v4643_v30 = vsub.f32 %v87_v61, %v1037_v24  ;;  %v1043_v55 = vand.u32 4294901760, %v89_v6  ;;  %v1046_v45 = vand.u32 4294901760, %v90_v22 }
  0x99   :  { %3569 = vmatprep.subr.bf16.mxu1 %v5600_v23  ;;  %v4641_v23 = vpack.c.bf16 %v1150_v52, %v1143_v5  ;;  %v1164_v4 = vand.u32 4294901760, %v1163_v47  ;;  %v5500_v62 = vand.u32 4294901760, %v4605_v18  ;;  %v4650_v5 = vpack.c.bf16 %v1276_v34, %v1269_v58 }
  0x9a   :  { %903 = vmatmul.mubr.f32.vlgmr.msra.gmra.mrb[4].mxu0 %v4305_v37  ;;  %v4652_v61 = vpack.c.bf16 %v1040_v59, %v1037_v24  ;;  %v4654_v52 = vsub.f32 %v88_v42, %v1040_v59  ;;  %v1283_v2 = vand.u32 4294901760, %v1282_v20  ;;  %v1290_v47 = vand.u32 4294901760, %v1289_v50  ;;  %v4687_v50 = vld [vmem:[#allocation5 + $0x168] sm:$0xff] }
  0x9b   :  { %3579 = vmatpush3.bf16.msra.mxu0 %v4511_v8  ;;  %1113 = vmatprep.mubr.f32.mxu0 %v1112_v11  ;;  %v5502_v11 = vand.u32 4294901760, %v4613_v35  ;;  %v4660_v8 = vld [vmem:[#allocation5 + $0x160] sm:$0xff]  ;;  %v4665_v34 = vsub.f32 %v106_v16, %v1094_v51  ;;  %v5629_v59 = vand.u32 4294901760, %v4603_v14  ;;  %v1097_v42 = vand.u32 4294901760, %v107_v48 }
  0x9c   :  { %3571 = vmatpush3.bf16.msra.mxu1 %v5602_v32  ;;  %3581 = vmatprep.subr.bf16.mxu0 %v4513_v54  ;;  %v4657_v32 = vpack.c.bf16 %v1094_v51, %v1091_v57  ;;  %v5501_v54 = vand.u32 4294901760, %v4631_v17  ;;  %v4672_v24 = vpack.c.bf16 %v1164_v4, %v1157_v27  ;;  %v4674_v20 = vpack.c.bf16 %v1046_v45, %v1043_v55 }
  0x9d   :  { %3573 = vmatprep.subr.bf16.mxu1 %v5603_v15  ;;  %v4663_v15 = vsub.f32 %v105_v29, %v1091_v57  ;;  %5628 = vst [vmem:[#allocation22_spill] sm:$0xff] %v4665_v34  ;;  %v1170_v58 = vsub.f32 %v4603_v14, %v5629_v59  ;;  %v1177_v29 = vsub.f32 %v4605_v18, %v5500_v62  ;;  %v1100_v57 = vand.u32 4294901760, %v108_v53 }
  0x9e   :  { %5626 = vst [vmem:[#allocation20_spill] sm:$0xff] %v4657_v32  ;;  %v4680_v16 = vsub.f32 %v89_v6, %v1043_v55  ;;  %v4682_v51 = vsub.f32 %v90_v22, %v1046_v45  ;;  %v5503_v27 = vand.u32 4294901760, %v4660_v8  ;;  %v3620_v4 = vpack.c.bf16 %v1290_v47, %v1283_v2  ;;  %v4697_v22 = vld [vmem:[#allocation5 + $0x1f8] sm:$0xff]  ;;  %v4720_v2 = vld [vmem:[#allocation5 + $0x170] sm:$0xff] }
  0x9f   :  { %3583 = vmatpush3.bf16.msra.mxu0 %v4521_v36  ;;  %5627 = vst [vmem:[#allocation21_spill] sm:$0xff] %v4663_v15  ;;  %v1303_v59 = vsub.f32 %v4631_v17, %v5501_v54  ;;  %v1171_v45 = vand.u32 4294901760, %v1170_v58  ;;  %v4701_v6 = vsub.f32 %v107_v48, %v1097_v42  ;;  %v43_v54 = vld [vmem:[#allocation2 + $0x10] sm:$0xff]  ;;  %v4707_v55 = vpack.c.bf16 %v1100_v57, %v1097_v42  ;;  %v4722_v42 = vld [vmem:[#allocation5 + $0x178] sm:$0xff] }
  0xa0   :  { %3575 = vmatpush3.bf16.msra.mxu1 %v5604_v28  ;;  %3585 = vmatprep.subr.bf16.mxu0 %v4543_v41  ;;  %v1296_v28 = vsub.f32 %v4613_v35, %v5502_v11  ;;  %v1178_v11 = vand.u32 4294901760, %v1177_v29  ;;  %v4709_v62 = vsub.f32 %v108_v53, %v1100_v57  ;;  %v4716_v58 = vsub.f32 %v4660_v8, %v5503_v27 }
  0xa1   :  { %3609 = vmatprep.subr.bf16.mxu1 %v4582_v13  ;;  %v4695_v13 = vld [vmem:[#allocation5 + $0x1f0] sm:$0xff]  ;;  %v1304_v53 = vand.u32 4294901760, %v1303_v59  ;;  %v5630_v29 = vand.u32 4294901760, %v4643_v30  ;;  %v5631_v57 = vand.u32 4294901760, %v4654_v52  ;;  %v4731_v27 = vand.u32 4294901760, %v43_v54 }
  0xa2   :  { %v1297_v48 = vand.u32 4294901760, %v1296_v28  ;;  %v1103_v47 = vand.u32 4294901760, %v4695_v13  ;;  %v5633_v41 = vand.u32 4294901760, %v4665_v34 }
  0xa3   :  { %1007 = vmatmul.mubr.f32.vlgmr.msra.gmra.mrb[4].mxu1 %v4305_v37  ;;  %3587 = vmatpush3.bf16.msra.mxu0 %v4556_v56  ;;  %v1052_v37 = vand.u32 4294901760, %v4687_v50  ;;  %v1191_v28 = vsub.f32 %v4654_v52, %v5631_v57  ;;  %v3622_v57 = vpack.c.bf16 %v1178_v11, %v1171_v45 }
  0xa4   :  { %3611 = vmatpush3.bf16.msra.mxu1 %v4584_v39  ;;  %3589 = vmatprep.subr.bf16.mxu0 %v4567_v44  ;;  %v1106_v39 = vand.u32 4294901760, %v4697_v22  ;;  %v5632_v44 = vand.u32 4294901760, %v4663_v15  ;;  %v1317_v59 = vsub.f32 %v4665_v34, %v5633_v41  ;;  %v4751_v41 = vsub.f32 %v4695_v13, %v1103_v47 }
  0xa5   :  { %3613 = vmatprep.subr.bf16.mxu1 %v4623_v31  ;;  %1349 = vmatprep.mubr.f32.mxu1 %v4523_v1  ;;  %v1184_v31 = vsub.f32 %v4643_v30, %v5630_v29  ;;  %v4745_v36 = vsub.f32 %v4687_v50, %v1052_v37  ;;  %v5524_v29 = vand.u32 4294901760, %v4709_v62  ;;  %v3624_v11 = vpack.c.bf16 %v1304_v53, %v1297_v48 }
  0xa6   :  { %v1310_v56 = vsub.f32 %v4663_v15, %v5632_v44  ;;  %v1058_v44 = vand.u32 4294901760, %v4722_v42  ;;  %v4754_v1 = vsub.f32 %v4697_v22, %v1106_v39  ;;  %v1192_v50 = vand.u32 4294901760, %v1191_v28 }
  0xa7   :  { %3591 = vmatpush3.bf16.msra.mxu0 %v4590_v49  ;;  %v1055_v49 = vand.u32 4294901760, %v4720_v2  ;;  %v1185_v45 = vand.u32 4294901760, %v1184_v31  ;;  %v5634_v13 = vand.u32 4294901760, %v4680_v16  ;;  %v5635_v22 = vand.u32 4294901760, %v4682_v51 }
  0xa8   :  { %3615 = vmatpush3.bf16.msra.mxu1 %v4641_v23  ;;  %3593 = vmatprep.subr.bf16.mxu0 %v4625_v46  ;;  %v4759_v46 = vsub.f32 %v43_v54, %v4731_v27  ;;  %v1311_v34 = vand.u32 4294901760, %v1310_v56  ;;  %v4774_v54 = vsub.f32 %v4722_v42, %v1058_v44  ;;  %v5636_v31 = vand.u32 4294901760, %v4701_v6 }
  0xa9   :  { %3617 = vmatprep.subr.bf16.mxu1 %v4650_v5  ;;  %v1318_v5 = vand.u32 4294901760, %v1317_v59  ;;  %v1198_v15 = vsub.f32 %v4680_v16, %v5634_v13  ;;  %v1205_v23 = vsub.f32 %v4682_v51, %v5635_v22  ;;  %v4771_v48 = vsub.f32 %v4720_v2, %v1055_v49 }
  0xaa   :  { %v1324_v28 = vsub.f32 %v4701_v6, %v5636_v31  ;;  %v1337_v59 = vand.u32 4294901760, %v4751_v41  ;;  %v5637_v42 = vand.u32 4294901760, %v4660_v8  ;;  %v4790_v22 = vpack.c.bf16 %v1106_v39, %v1103_v47 }
  0xab   :  { %3595 = vmatpush3.bf16.msra.mxu0 %v4652_v61  ;;  %v3626_v53 = vpack.c.bf16 %v1192_v50, %v1185_v45  ;;  %v3628_v31 = vpack.c.bf16 %v1318_v5, %v1311_v34  ;;  %v1199_v56 = vand.u32 4294901760, %v1198_v15  ;;  %v5639_v8 = vand.u32 4294901760, %v4745_v36 }
  0xac   :  { %3619 = vmatpush3.bf16.msra.mxu1 %v4672_v24  ;;  %3597 = vmatprep.subr.bf16.mxu0 %v4657_v32  ;;  %v1331_v24 = vsub.f32 %v4709_v62, %v5524_v29  ;;  %v4788_v13 = vpack.c.bf16 %v1052_v37, %v5637_v42  ;;  %v1206_v32 = vand.u32 4294901760, %v1205_v23  ;;  %v5638_v29 = vand.u32 4294901760, %v4716_v58 }
  0xad   :  { %3621 = vmatprep.subr.bf16.mxu1 %v3620_v4  ;;  %v1116_v4 = vand.u32 4294901760, %v4759_v46  ;;  %v1219_v47 = vsub.f32 %v4745_v36, %v5639_v8  ;;  %v5525_v37 = vand.u32 4294901760, %v4771_v48  ;;  %v5526_v39 = vand.u32 4294901760, %v4774_v54 }
  0xae   :  { %v1212_v2 = vsub.f32 %v4716_v58, %v5638_v29  ;;  %v1325_v45 = vand.u32 4294901760, %v1324_v28  ;;  %v1332_v34 = vand.u32 4294901760, %v1331_v24  ;;  %v1338_v15 = vsub.f32 %v4751_v41, %v1337_v59 }
  0xaf   :  { %3599 = vmatpush3.bf16.msra.mxu0 %v4674_v20  ;;  %v1117_v29 = vsub.f32 %v4759_v46, %v1116_v4  ;;  %v4813_v50 = vpack.c.bf16 %v1058_v44, %v1055_v49  ;;  %v3630_v5 = vpack.c.bf16 %v1206_v32, %v1199_v56  ;;  %v1220_v24 = vand.u32 4294901760, %v1219_v47 }
  0xb0   :  { %3623 = vmatpush3.bf16.msra.mxu1 %v3622_v57  ;;  %3601 = vmatprep.subr.bf16.mxu0 %v4707_v55  ;;  %v5640_v57 = vand.u32 4294901760, %v4754_v1  ;;  %v1213_v28 = vand.u32 4294901760, %v1212_v2  ;;  %v1226_v42 = vsub.f32 %v4771_v48, %v5525_v37  ;;  %v1233_v8 = vsub.f32 %v4774_v54, %v5526_v39 }
  0xb1   :  { %3625 = vmatprep.subr.bf16.mxu1 %v3624_v11  ;;  %v3640_v11 = vpack.c.bf16 %v4459_v12, %v4457_v43  ;;  %v3632_v49 = vpack.c.bf16 %v1332_v34, %v1325_v45  ;;  %v1339_v44 = vand.u32 4294901760, %v1338_v15  ;;  %v1118_v56 = vand.u32 4294901760, %v1117_v29  ;;  %v5641_v29 = vld [vmem:[#allocation11_spill] sm:$0xff] }
  0xb2   :  { %v1345_v23 = vsub.f32 %v4754_v1, %v5640_v57  ;;  %v3634_v2 = vpack.c.bf16 %v1220_v24, %v1213_v28  ;;  %v3644_v47 = vpack.c.bf16 %v4519_v25, %v4517_v21  ;;  %v1227_v57 = vand.u32 4294901760, %v1226_v42  ;;  %v5644_v24 = vld [vmem:[#allocation16_spill] sm:$0xff]  ;;  %v5645_v42 = vld [vmem:[#allocation21_spill] sm:$0xff] }
  0xb3   :  { %3603 = vmatpush3.bf16.msra.mxu0 %v4788_v13  ;;  %v1234_v37 = vand.u32 4294901760, %v1233_v8  ;;  %v3648_v34 = vpack.c.bf16 %v4547_v63, %v4545_v3  ;;  %v3650_v15 = vpack.c.bf16 %v4560_v10, %v4558_v60  ;;  %v3658_v28 = vpack.c.bf16 %v4654_v52, %v4643_v30  ;;  %v5646_v8 = vld [vmem:[#allocation22_spill] sm:$0xff] }
  0xb4   :  { %3627 = vmatpush3.bf16.msra.mxu1 %v3626_v53  ;;  %3605 = vmatprep.subr.bf16.mxu0 %v4790_v22  ;;  %v1346_v32 = vand.u32 4294901760, %v1345_v23  ;;  %v3642_v53 = vpack.c.bf16 %v4463_v33, %v4461_v7  ;;  %v3652_v23 = vpack.c.bf16 %v4578_v9, %v4576_v26 }
  0xb5   :  { %3629 = vmatprep.subr.bf16.mxu1 %v3628_v31  ;;  %v3646_v31 = vpack.c.bf16 %v4531_v38, %v4526_v40  ;;  %v3638_v45 = vpack.c.bf16 %v1234_v37, %v1227_v57  ;;  %v3654_v37 = vpack.c.bf16 %v4605_v18, %v4603_v14  ;;  %v3668_v57 = vpack.c.bf16 %v4754_v1, %v4751_v41 }
  0xb6   :  { %v3636_v39 = vpack.c.bf16 %v1346_v32, %v1339_v44  ;;  %v5647_v44 = vld [vmem:[#allocation14_spill] sm:$0xff]  ;;  %v3662_v32 = vpack.c.bf16 %v4682_v51, %v4680_v16 }
  0xb7   :  { %3607 = vmatpush3.bf16.msra.mxu0 %v4813_v50 }
  0xb8   :  { %3631 = vmatpush3.bf16.msra.mxu1 %v3630_v5  ;;  %3641 = vmatprep.subr.bf16.mxu0 %v3640_v11  ;;  %v5642_v5 = vld [vmem:[#allocation12_spill] sm:$0xff]  ;;  %v5643_v11 = vand.u32 4294901760, %v4550_v0 }
  0xb9   :  { %3633 = vmatprep.subr.bf16.mxu1 %v3632_v49  ;;  %v3660_v49 = vpack.c.bf16 %v5646_v8, %v5645_v42 }
  0xba   :  { %1119 = vmatmul.mubr.f32.vlgmr.msra.gmra.mrb[6].mxu0 %v1118_v56  ;;  %v5648_v56 = vld [vmem:[#allocation15_spill] sm:$0xff] }
  0xbb   :  { %3643 = vmatpush3.bf16.msra.mxu0 %v3642_v53  ;;  %1486 = vmatprep.mubr.f32.mxu0 %v4550_v0  ;;  %v3664_v0 = vpack.c.bf16 %v4709_v62, %v4701_v6  ;;  %v5649_v53 = vld [vmem:[#allocation17_spill] sm:$0xff] }
  0xbc   :  { %3635 = vmatpush3.bf16.msra.mxu1 %v3634_v2  ;;  %3645 = vmatprep.subr.bf16.mxu0 %v3644_v47  ;;  %v3666_v2 = vpack.c.bf16 %v4745_v36, %v4716_v58  ;;  %v5650_v47 = vld [vmem:[#allocation18_spill] sm:$0xff] }
  0xbd   :  { %3637 = vmatprep.subr.bf16.mxu1 %v3636_v39  ;;  %v3656_v39 = vpack.c.bf16 %v4631_v17, %v4613_v35 }
  0xbf   :  { %3647 = vmatpush3.bf16.msra.mxu0 %v3646_v31  ;;  %v5651_v31 = vld [vmem:[#allocation19_spill] sm:$0xff] }
  0xc0   :  { %3639 = vmatpush3.bf16.msra.mxu1 %v3638_v45  ;;  %3649 = vmatprep.subr.bf16.mxu0 %v3648_v34  ;;  %v3670_v45 = vpack.c.bf16 %v4774_v54, %v4771_v48  ;;  %v5652_v34 = vand.u32 4294901760, %v4457_v43  ;;  %v127_v43 = vld [vmem:[#allocation5 + $0x280] sm:$0xff] }
  0xc1   :  { %3673 = vmatprep.subr.bf16.mxu1 %v4505_v19 }
  0xc3   :  { %1351 = vmatmul.mubr.f32.vlgmr.msra.gmra.mrb[6].mxu1 %v4731_v27  ;;  %3651 = vmatpush3.bf16.msra.mxu0 %v3650_v15  ;;  %v5653_v15 = vand.u32 4294901760, %v4459_v12  ;;  %v5659_v12 = vand.u32 4294901760, %v4526_v40  ;;  %v5664_v40 = vand.u32 4294901760, %v4558_v60  ;;  %v5668_v60 = vand.u32 4294901760, %v4603_v14 }
  0xc4   :  { %3675 = vmatpush3.bf16.msra.mxu1 %v5641_v29  ;;  %3653 = vmatprep.subr.bf16.mxu0 %v3652_v23  ;;  %v5675_v14 = vand.u32 4294901760, %v5646_v8 }
  0xc5   :  { %3677 = vmatprep.subr.bf16.mxu1 %v5642_v5  ;;  %1593 = vmatprep.mubr.f32.mxu1 %v5643_v11  ;;  %v3704_v23 = vpack.c.bf16 %v5653_v15, %v5652_v34  ;;  %v5656_v11 = vand.u32 4294901760, %v4463_v33  ;;  %v1923_v34 = vand.u32 4294901760, %v127_v43  ;;  %v111_v15 = vld [vmem:[#allocation5 + $0x200] sm:$0xff] }
  0xc7   :  { %3655 = vmatpush3.bf16.msra.mxu0 %v3654_v37  ;;  %v5654_v37 = vld [vmem:[#allocation20_spill] sm:$0xff] }
  0xc8   :  { %3679 = vmatpush3.bf16.msra.mxu1 %v5644_v24  ;;  %3657 = vmatprep.subr.bf16.mxu0 %v3656_v39  ;;  %v5655_v39 = vand.u32 4294901760, %v4461_v7  ;;  %v5660_v7 = vand.u32 4294901760, %v4531_v38  ;;  %v5665_v38 = vand.u32 4294901760, %v4560_v10  ;;  %v5669_v10 = vand.u32 4294901760, %v4605_v18 }
  0xc9   :  { %3681 = vmatprep.subr.bf16.mxu1 %v5647_v44 }
  0xca   :  { %v3710_v33 = vpack.c.bf16 %v5660_v7, %v5659_v12  ;;  %v3718_v7 = vpack.c.bf16 %v5669_v10, %v5668_v60  ;;  %v132_v10 = vld [vmem:[#allocation5 + $0x2a8] sm:$0xff] }
  0xcb   :  { %3659 = vmatpush3.bf16.msra.mxu0 %v3658_v28  ;;  %v3706_v28 = vpack.c.bf16 %v5656_v11, %v5655_v39  ;;  %v3714_v39 = vpack.c.bf16 %v5665_v38, %v5664_v40  ;;  %v114_v40 = vld [vmem:[#allocation5 + $0x218] sm:$0xff]  ;;  %v5673_v38 = vand.u32 4294901760, %v4654_v52  ;;  %v5678_v52 = vand.u32 4294901760, %v4701_v6 }
  0xcc   :  { %3683 = vmatpush3.bf16.msra.mxu1 %v5648_v56  ;;  %3661 = vmatprep.subr.bf16.mxu0 %v3660_v49  ;;  %v5657_v49 = vand.u32 4294901760, %v4517_v21  ;;  %v5662_v21 = vand.u32 4294901760, %v4545_v3  ;;  %v5666_v3 = vand.u32 4294901760, %v4576_v26  ;;  %v113_v26 = vld [vmem:[#allocation5 + $0x210] sm:$0xff]  ;;  %v5680_v6 = vand.u32 4294901760, %v4716_v58 }
  0xcd   :  { %3685 = vmatprep.subr.bf16.mxu1 %v5649_v53  ;;  %v5684_v58 = vand.u32 4294901760, %v4774_v54 }
  0xcf   :  { %3663 = vmatpush3.bf16.msra.mxu0 %v3662_v32  ;;  %v5658_v32 = vand.u32 4294901760, %v4519_v25  ;;  %v5663_v25 = vand.u32 4294901760, %v4547_v63  ;;  %v5667_v63 = vand.u32 4294901760, %v4578_v9  ;;  %v5672_v9 = vand.u32 4294901760, %v4643_v30 }
  0xd0   :  { %3687 = vmatpush3.bf16.msra.mxu1 %v5650_v47  ;;  %3665 = vmatprep.subr.bf16.mxu0 %v3664_v0  ;;  %v5677_v30 = vand.u32 4294901760, %v4682_v51  ;;  %v46_v51 = vld [vmem:[#allocation2 + $0x28] sm:$0xff] }
  0xd1   :  { %3689 = vmatprep.subr.bf16.mxu1 %v5651_v31  ;;  %v3708_v0 = vpack.c.bf16 %v5658_v32, %v5657_v49  ;;  %v130_v49 = vld [vmem:[#allocation5 + $0x298] sm:$0xff]  ;;  %v3716_v32 = vpack.c.bf16 %v5667_v63, %v5666_v3  ;;  %v3722_v3 = vpack.c.bf16 %v5673_v38, %v5672_v9 }
  0xd2   :  { %v1932_v60 = vand.u32 4294901760, %v130_v49 }
  0xd3   :  { %3667 = vmatpush3.bf16.msra.mxu0 %v3666_v2  ;;  %v5661_v2 = vld [vmem:[#allocation13_spill] sm:$0xff] }
  0xd4   :  { %3691 = vmatpush3.bf16.msra.mxu1 %v4652_v61  ;;  %3669 = vmatprep.subr.bf16.mxu0 %v3668_v57  ;;  %v3712_v57 = vpack.c.bf16 %v5663_v25, %v5662_v21  ;;  %v5671_v21 = vand.u32 4294901760, %v4631_v17  ;;  %v5676_v17 = vand.u32 4294901760, %v4680_v16  ;;  %v1881_v16 = vand.u32 4294901760, %v113_v26 }
  0xd5   :  { %3693 = vmatprep.subr.bf16.mxu1 %v5654_v37  ;;  %v4968_v38 = vsub.f32 %v130_v49, %v1932_v60  ;;  %v134_v49 = vld [vmem:[#allocation5 + $0x2b8] sm:$0xff] }
  0xd7   :  { %3671 = vmatpush3.bf16.msra.mxu0 %v3670_v45  ;;  %v128_v45 = vld [vmem:[#allocation5 + $0x288] sm:$0xff] }
  0xd8   :  { %3695 = vmatpush3.bf16.msra.mxu1 %v4674_v20  ;;  %3705 = vmatprep.subr.bf16.mxu0 %v3704_v23  ;;  %v112_v23 = vld [vmem:[#allocation5 + $0x208] sm:$0xff]  ;;  %v1926_v11 = vand.u32 4294901760, %v128_v45 }
  0xd9   :  { %3697 = vmatprep.subr.bf16.mxu1 %v4707_v55  ;;  %v1878_v12 = vand.u32 4294901760, %v112_v23 }
  0xda   :  { %1489 = vmatmul.mubr.f32.vlgmr.msra.gmra.mrb[8].mxu0 %v4759_v46 }
  0xdb   :  { %3707 = vmatpush3.bf16.msra.mxu0 %v3706_v28  ;;  %1763 = vmatprep.mubr.f32.mxu0 %v5661_v2  ;;  %v129_v28 = vld [vmem:[#allocation5 + $0x290] sm:$0xff] }
  0xdc   :  { %3699 = vmatpush3.bf16.msra.mxu1 %v4788_v13  ;;  %3709 = vmatprep.subr.bf16.mxu0 %v3708_v0  ;;  %v1875_v0 = vand.u32 4294901760, %v111_v15  ;;  %v1929_v63 = vand.u32 4294901760, %v129_v28 }
  0xdd   :  { %3701 = vmatprep.subr.bf16.mxu1 %v4790_v22 }
  0xde   :  { %v4941_v46 = vsub.f32 %v111_v15, %v1875_v0 }
  0xdf   :  { %3711 = vmatpush3.bf16.msra.mxu0 %v3710_v33  ;;  %v5670_v33 = vand.u32 4294901760, %v4613_v35  ;;  %v131_v35 = vld [vmem:[#allocation5 + $0x2a0] sm:$0xff] }
  0xe0   :  { %3703 = vmatpush3.bf16.msra.mxu1 %v4813_v50  ;;  %3713 = vmatprep.subr.bf16.mxu0 %v3712_v57  ;;  %v4914_v57 = vsub.f32 %v127_v43, %v1923_v34  ;;  %v4930_v43 = vpack.c.bf16 %v5677_v30, %v5676_v17  ;;  %v5527_v17 = vand.u32 4294901760, %v4968_v38 }
  0xe1   :  { %3737 = vmatprep.subr.bf16.mxu1 %v4505_v19  ;;  %v3720_v25 = vpack.c.bf16 %v5671_v21, %v5670_v33  ;;  %v5674_v19 = vand.u32 4294901760, %v5645_v42  ;;  %v5679_v42 = vand.u32 4294901760, %v4709_v62  ;;  %v4938_v33 = vsub.f32 %v128_v45, %v1926_v11 }
  0xe2   :  { %v5681_v62 = vand.u32 4294901760, %v4745_v36  ;;  %v1935_v45 = vand.u32 4294901760, %v131_v35  ;;  %v5537_v15 = vand.u32 4294901760, %v4914_v57  ;;  %v4966_v36 = vsub.f32 %v129_v28, %v1929_v63 }
  0xe3   :  { %v3724_v18 = vpack.c.bf16 %v5675_v14, %v5674_v19  ;;  %1597 = vmatmul.mubr.f32.vlgmr.msra.gmra.mrb[8].mxu1 %v1116_v4  ;;  %3715 = vmatpush3.bf16.msra.mxu0 %v3714_v39  ;;  %v4936_v8 = vpack.c.bf16 %v5679_v42, %v5678_v52  ;;  %v4943_v4 = vsub.f32 %v112_v23, %v1878_v12  ;;  %v1884_v39 = vand.u32 4294901760, %v114_v40 }
  0xe4   :  { %3739 = vmatpush3.bf16.msra.mxu1 %v5641_v29  ;;  %3717 = vmatprep.subr.bf16.mxu0 %v3716_v32  ;;  %v4950_v21 = vpack.c.bf16 %v5681_v62, %v5680_v6  ;;  %v1938_v29 = vand.u32 4294901760, %v132_v10  ;;  %v5682_v23 = vand.u32 4294901760, %v4754_v1  ;;  %v4972_v19 = vpack.c.bf16 %v1878_v12, %v1875_v0  ;;  %v115_v1 = vld [vmem:[#allocation5 + $0x220] sm:$0xff] }
  0xe5   :  { %3741 = vmatprep.subr.bf16.mxu1 %v5642_v5  ;;  %1867 = vmatprep.mubr.f32.mxu1 %v5661_v2  ;;  %v5683_v5 = vand.u32 4294901760, %v4771_v48  ;;  %v4970_v2 = vpack.c.bf16 %v1926_v11, %v1923_v34  ;;  %v5535_v41 = vand.u32 4294901760, %v4938_v33  ;;  %v4975_v14 = vand.u32 4294901760, %v46_v51  ;;  %v133_v11 = vld [vmem:[#allocation5 + $0x2b0] sm:$0xff] }
  0xe6   :  { %v4958_v32 = vpack.c.bf16 %v5682_v23, %v1337_v59  ;;  %5685 = vst [vmem:[#allocation11_spill] sm:$0xff] %v4972_v19  ;;  %v116_v59 = vld [vmem:[#allocation5 + $0x228] sm:$0xff]  ;;  %v4978_v48 = vpack.c.bf16 %v1932_v60, %v1929_v63  ;;  %v4980_v54 = vpack.c.bf16 %v1884_v39, %v1881_v16  ;;  %v5532_v28 = vand.u32 4294901760, %v4941_v46 }
  0xe7   :  { %v4964_v9 = vpack.c.bf16 %v5684_v58, %v5683_v5  ;;  %3719 = vmatpush3.bf16.msra.mxu0 %v3718_v7  ;;  %5686 = vst [vmem:[#allocation12_spill] sm:$0xff] %v4975_v14  ;;  %v5531_v34 = vand.u32 4294901760, %v4943_v4  ;;  %v4985_v0 = vsub.f32 %v113_v26, %v1881_v16  ;;  %v4987_v12 = vsub.f32 %v114_v40, %v1884_v39 }
  0xe8   :  { %3743 = vmatpush3.bf16.msra.mxu1 %v5644_v24  ;;  %3721 = vmatprep.subr.bf16.mxu0 %v3720_v25  ;;  %5687 = vst [vmem:[#allocation16_spill] sm:$0xff] %v4978_v48  ;;  %5688 = vst [vmem:[#allocation21_spill] sm:$0xff] %v4980_v54  ;;  %v4989_v7 = vpack.c.bf16 %v1938_v29, %v1935_v45  ;;  %v2102_v24 = vsub.f32 %v4914_v57, %v5537_v15  ;;  %v1887_v25 = vand.u32 4294901760, %v115_v1 }
  0xe9   :  { %3745 = vmatprep.subr.bf16.mxu1 %v5647_v44  ;;  %v1890_v63 = vand.u32 4294901760, %v116_v59  ;;  %v5528_v60 = vand.u32 4294901760, %v4966_v36  ;;  %v2109_v44 = vsub.f32 %v4938_v33, %v5535_v41  ;;  %v1941_v26 = vand.u32 4294901760, %v133_v11 }
  0xea   :  { %5689 = vst [vmem:[#allocation22_spill] sm:$0xff] %v4989_v7  ;;  %v1944_v40 = vand.u32 4294901760, %v134_v49  ;;  %v5000_v30 = vsub.f32 %v46_v51, %v4975_v14  ;;  %v5003_v52 = vsub.f32 %v131_v35, %v1935_v45  ;;  %v1990_v42 = vsub.f32 %v4941_v46, %v5532_v28  ;;  %v117_v51 = vld [vmem:[#allocation5 + $0x230] sm:$0xff]  ;;  %v120_v28 = vld [vmem:[#allocation5 + $0x248] sm:$0xff] }
  0xeb   :  { %3723 = vmatpush3.bf16.msra.mxu0 %v3722_v3  ;;  %v1997_v3 = vsub.f32 %v4943_v4, %v5531_v34  ;;  %v5012_v16 = vsub.f32 %v132_v10, %v1938_v29  ;;  %v2103_v39 = vand.u32 4294901760, %v2102_v24  ;;  %v5530_v6 = vand.u32 4294901760, %v4985_v0  ;;  %v118_v10 = vld [vmem:[#allocation5 + $0x238] sm:$0xff] }
  0xec   :  { %3747 = vmatpush3.bf16.msra.mxu1 %v5648_v56  ;;  %3725 = vmatprep.subr.bf16.mxu0 %v3724_v18  ;;  %v5529_v56 = vand.u32 4294901760, %v4987_v12  ;;  %v5016_v18 = vpack.c.bf16 %v1890_v63, %v1887_v25  ;;  %v5018_v35 = vsub.f32 %v115_v1, %v1887_v25  ;;  %v2116_v62 = vsub.f32 %v4966_v36, %v5528_v60  ;;  %v136_v60 = vld [vmem:[#allocation5 + $0x2c8] sm:$0xff] }
  0xed   :  { %3749 = vmatprep.subr.bf16.mxu1 %v5649_v53  ;;  %v2123_v53 = vsub.f32 %v4968_v38, %v5527_v17  ;;  %v2110_v45 = vand.u32 4294901760, %v2109_v44  ;;  %v5027_v29 = vsub.f32 %v116_v59, %v1890_v63  ;;  %v5029_v23 = vpack.c.bf16 %v1944_v40, %v1941_v26  ;;  %v135_v17 = vld [vmem:[#allocation5 + $0x2c0] sm:$0xff] }
  0xee   :  { %5690 = vst [vmem:[#allocation14_spill] sm:$0xff] %v5016_v18  ;;  %v5538_v5 = vand.u32 4294901760, %v5000_v30  ;;  %v1991_v58 = vand.u32 4294901760, %v1990_v42  ;;  %v1998_v1 = vand.u32 4294901760, %v1997_v3  ;;  %v5034_v24 = vsub.f32 %v133_v11, %v1941_v26  ;;  %v119_v42 = vld [vmem:[#allocation5 + $0x240] sm:$0xff] }
  0xef   :  { %3727 = vmatpush3.bf16.msra.mxu0 %v4930_v43  ;;  %5691 = vst [vmem:[#allocation15_spill] sm:$0xff] %v5029_v23  ;;  %v1893_v25 = vand.u32 4294901760, %v117_v51  ;;  %v5037_v43 = vsub.f32 %v134_v49, %v1944_v40  ;;  %v1896_v59 = vand.u32 4294901760, %v118_v10  ;;  %v2004_v63 = vsub.f32 %v4985_v0, %v5530_v6 }
  0xf0   :  { %3751 = vmatpush3.bf16.msra.mxu1 %v5650_v47  ;;  %3729 = vmatprep.subr.bf16.mxu0 %v4936_v8  ;;  %v2011_v47 = vsub.f32 %v4987_v12, %v5529_v56  ;;  %v2117_v8 = vand.u32 4294901760, %v2116_v62  ;;  %v2124_v44 = vand.u32 4294901760, %v2123_v53  ;;  %v5534_v11 = vand.u32 4294901760, %v5003_v52 }
  0xf1   :  { %3753 = vmatprep.subr.bf16.mxu1 %v5651_v31  ;;  %v5533_v26 = vand.u32 4294901760, %v5012_v16  ;;  %v5048_v31 = vpack.c.bf16 %v2110_v45, %v2103_v39  ;;  %v1947_v49 = vand.u32 4294901760, %v135_v17  ;;  %v1950_v40 = vand.u32 4294901760, %v136_v60 }
  0xf2   :  { %v1973_v3 = vsub.f32 %v5000_v30, %v5538_v5  ;;  %v5055_v62 = vpack.c.bf16 %v1998_v1, %v1991_v58  ;;  %v5057_v53 = vsub.f32 %v117_v51, %v1893_v25  ;;  %v5536_v56 = vand.u32 4294901760, %v5018_v35  ;;  %v138_v1 = vld [vmem:[#allocation5 + $0x2d8] sm:$0xff] }
  0xf3   :  { %3731 = vmatpush3.bf16.msra.mxu0 %v4950_v21  ;;  %v5539_v21 = vand.u32 4294901760, %v5027_v29  ;;  %v5062_v39 = vpack.c.bf16 %v1896_v59, %v1893_v25  ;;  %v5064_v45 = vsub.f32 %v118_v10, %v1896_v59  ;;  %v2005_v6 = vand.u32 4294901760, %v2004_v63  ;;  %v137_v10 = vld [vmem:[#allocation5 + $0x2d0] sm:$0xff]  ;;  %v122_v5 = vld [vmem:[#allocation5 + $0x258] sm:$0xff] }
  0xf4   :  { %3755 = vmatpush3.bf16.msra.mxu1 %v4652_v61  ;;  %3733 = vmatprep.subr.bf16.mxu0 %v4958_v32  ;;  %v2012_v34 = vand.u32 4294901760, %v2011_v47  ;;  %v5066_v61 = vpack.c.bf16 %v2124_v44, %v2117_v8  ;;  %v2130_v32 = vsub.f32 %v5003_v52, %v5534_v11  ;;  %v2137_v51 = vsub.f32 %v5012_v16, %v5533_v26 }
  0xf5   :  { %3757 = vmatprep.subr.bf16.mxu1 %v5654_v37  ;;  %5692 = vst [vmem:[#allocation17_spill] sm:$0xff] %v5062_v39  ;;  %v1899_v58 = vand.u32 4294901760, %v119_v42  ;;  %v5075_v37 = vpack.c.bf16 %v1950_v40, %v1947_v49  ;;  %v5541_v25 = vand.u32 4294901760, %v5034_v24  ;;  %v5540_v59 = vand.u32 4294901760, %v5037_v43 }
  0xf6   :  { %v1974_v63 = vand.u32 4294901760, %v1973_v3  ;;  %v5081_v47 = vsub.f32 %v135_v17, %v1947_v49  ;;  %v1902_v8 = vand.u32 4294901760, %v120_v28  ;;  %v2025_v44 = vsub.f32 %v5027_v29, %v5539_v21 }
  0xf7   :  { %3735 = vmatpush3.bf16.msra.mxu0 %v4964_v9  ;;  %5693 = vst [vmem:[#allocation18_spill] sm:$0xff] %v5075_v37  ;;  %v2018_v9 = vsub.f32 %v5018_v35, %v5536_v56  ;;  %v5090_v26 = vpack.c.bf16 %v2012_v34, %v2005_v6  ;;  %v5092_v3 = vsub.f32 %v136_v60, %v1950_v40  ;;  %v5544_v11 = vand.u32 4294901760, %v5057_v53 }
  0xf8   :  { %3759 = vmatpush3.bf16.msra.mxu1 %v4674_v20  ;;  %3769 = vmatprep.subr.bf16.mxu0 %v4970_v2  ;;  %v121_v20 = vld [vmem:[#allocation5 + $0x250] sm:$0xff]  ;;  %v5547_v17 = vand.u32 4294901760, %v5064_v45  ;;  %v2131_v49 = vand.u32 4294901760, %v2130_v32  ;;  %v2138_v41 = vand.u32 4294901760, %v2137_v51  ;;  %v1953_v56 = vand.u32 4294901760, %v137_v10 }
  0xf9   :  { %3761 = vmatprep.subr.bf16.mxu1 %v4707_v55  ;;  %v1956_v15 = vand.u32 4294901760, %v138_v1  ;;  %v5098_v21 = vsub.f32 %v119_v42, %v1899_v58  ;;  %v2144_v55 = vsub.f32 %v5034_v24, %v5541_v25  ;;  %v2151_v34 = vsub.f32 %v5037_v43, %v5540_v59  ;;  %v139_v59 = vld [vmem:[#allocation5 + $0x2e0] sm:$0xff] }
  0xfa   :  { %1765 = vmatmul.mubr.f32.vlgmr.msra.gmra.mrb[10].mxu0 %v4731_v27  ;;  %v5108_v60 = vpack.c.bf16 %v1902_v8, %v1899_v58  ;;  %v2019_v6 = vand.u32 4294901760, %v2018_v9  ;;  %v2026_v40 = vand.u32 4294901760, %v2025_v44  ;;  %v1905_v32 = vand.u32 4294901760, %v121_v20  ;;  %v5136_v25 = vld [vmem:[#allocation5 + $0x260] sm:$0xff] }
  0xfb   :  { %3771 = vmatpush3.bf16.msra.mxu0 %v4972_v19  ;;  %1975 = vmatprep.mubr.f32.mxu0 %v1974_v63  ;;  %v1908_v42 = vand.u32 4294901760, %v122_v5  ;;  %v2032_v51 = vsub.f32 %v5057_v53, %v5544_v11  ;;  %v2039_v63 = vsub.f32 %v5064_v45, %v5547_v17  ;;  %v5118_v58 = vpack.c.bf16 %v2138_v41, %v2131_v49 }
  0xfc   :  { %3763 = vmatpush3.bf16.msra.mxu1 %v4788_v13  ;;  %3773 = vmatprep.subr.bf16.mxu0 %v4978_v48  ;;  %v140_v13 = vld [vmem:[#allocation5 + $0x2e8] sm:$0xff]  ;;  %v5120_v9 = vsub.f32 %v120_v28, %v1902_v8  ;;  %v5122_v44 = vpack.c.bf16 %v1956_v15, %v1953_v56  ;;  %v5126_v48 = vsub.f32 %v137_v10, %v1953_v56  ;;  %v2145_v19 = vand.u32 4294901760, %v2144_v55 }
  0xfd   :  { %3765 = vmatprep.subr.bf16.mxu1 %v4790_v22  ;;  %v5548_v22 = vand.u32 4294901760, %v5092_v3  ;;  %v5128_v11 = vsub.f32 %v138_v1, %v1956_v15  ;;  %v2152_v17 = vand.u32 4294901760, %v2151_v34  ;;  %v5132_v41 = vpack.c.bf16 %v2026_v40, %v2019_v6  ;;  %v5144_v55 = vld [vmem:[#allocation5 + $0x268] sm:$0xff]  ;;  %v5153_v40 = vld [vmem:[#allocation5 + $0x2f0] sm:$0xff] }
  0xfe   :  { %5694 = vst [vmem:[#allocation19_spill] sm:$0xff] %v5126_v48  ;;  %v5134_v28 = vsub.f32 %v121_v20, %v1905_v32  ;;  %v1959_v8 = vand.u32 4294901760, %v139_v59  ;;  %v1962_v49 = vand.u32 4294901760, %v140_v13  ;;  %v5139_v56 = vpack.c.bf16 %v1908_v42, %v1905_v32  ;;  %v5155_v32 = vld [vmem:[#allocation5 + $0x2f8] sm:$0xff] }
  0xff   :  { %3775 = vmatpush3.bf16.msra.mxu0 %v4980_v54  ;;  %5695 = vst [vmem:[#allocation20_spill] sm:$0xff] %v5128_v11  ;;  %v2033_v15 = vand.u32 4294901760, %v2032_v51  ;;  %v2040_v10 = vand.u32 4294901760, %v2039_v63  ;;  %v5696_v1 = vand.u32 4294901760, %v5081_v47  ;;  %v5146_v34 = vsub.f32 %v122_v5, %v1908_v42 }
 0x100   :  { %3767 = vmatpush3.bf16.msra.mxu1 %v4813_v50  ;;  %3777 = vmatprep.subr.bf16.mxu0 %v4989_v7  ;;  %v2165_v20 = vsub.f32 %v5092_v3, %v5548_v22  ;;  %v3812_v51 = vpack.c.bf16 %v2152_v17, %v2145_v19  ;;  %v1911_v5 = vand.u32 4294901760, %v5136_v25  ;;  %v5164_v22 = vpack.c.bf16 %v1962_v49, %v1959_v8 }
 0x101   :  { %3801 = vmatprep.subr.bf16.mxu1 %v5048_v31  ;;  %v2158_v50 = vsub.f32 %v5081_v47, %v5696_v1  ;;  %v45_v1 = vld [vmem:[#allocation2 + $0x20] sm:$0xff]  ;;  %v5166_v31 = vsub.f32 %v139_v59, %v1959_v8  ;;  %v5168_v6 = vsub.f32 %v140_v13, %v1962_v49  ;;  %v3814_v19 = vpack.c.bf16 %v2040_v10, %v2033_v15 }
 0x102   :  { %v1965_v42 = vand.u32 4294901760, %v5153_v40  ;;  %v1968_v63 = vand.u32 4294901760, %v5155_v32  ;;  %v2166_v59 = vand.u32 4294901760, %v2165_v20  ;;  %v5697_v13 = vand.u32 4294901760, %v5098_v21 }
 0x103   :  { %1869 = vmatmul.mubr.f32.vlgmr.msra.gmra.mrb[10].mxu1 %v4731_v27  ;;  %3779 = vmatpush3.bf16.msra.mxu0 %v5016_v18  ;;  %v1914_v27 = vand.u32 4294901760, %v5144_v55  ;;  %v2159_v17 = vand.u32 4294901760, %v2158_v50  ;;  %v5174_v18 = vld [vmem:[#allocation5 + $0x270] sm:$0xff]  ;;  %v5698_v49 = vand.u32 4294901760, %v5120_v9  ;;  %v5185_v15 = vand.u32 4294901760, %v45_v1 }
 0x104   :  { %3803 = vmatpush3.bf16.msra.mxu1 %v5055_v62  ;;  %3781 = vmatprep.subr.bf16.mxu0 %v5029_v23  ;;  %v5176_v62 = vld [vmem:[#allocation5 + $0x278] sm:$0xff]  ;;  %v2046_v8 = vsub.f32 %v5098_v21, %v5697_v13  ;;  %v5699_v10 = vand.u32 4294901760, %v5126_v48  ;;  %v5700_v23 = vand.u32 4294901760, %v5128_v11  ;;  %v5211_v13 = vsub.f32 %v5155_v32, %v1968_v63 }
 0x105   :  { %3805 = vmatprep.subr.bf16.mxu1 %v5066_v61  ;;  %2211 = vmatprep.mubr.f32.mxu1 %v4975_v14  ;;  %v2053_v61 = vsub.f32 %v5120_v9, %v5698_v49  ;;  %v5199_v49 = vsub.f32 %v5136_v25, %v1911_v5  ;;  %v1920_v7 = vand.u32 4294901760, %v5176_v62  ;;  %v5567_v25 = vand.u32 4294901760, %v5168_v6 }
 0x106   :  { %v2172_v50 = vsub.f32 %v5126_v48, %v5699_v10  ;;  %v2179_v20 = vsub.f32 %v5128_v11, %v5700_v23  ;;  %v1917_v10 = vand.u32 4294901760, %v5174_v18  ;;  %v5208_v23 = vsub.f32 %v5153_v40, %v1965_v42 }
 0x107   :  { %3783 = vmatpush3.bf16.msra.mxu0 %v5062_v39  ;;  %v5202_v39 = vsub.f32 %v5144_v55, %v1914_v27  ;;  %v3816_v14 = vpack.c.bf16 %v2166_v59, %v2159_v17  ;;  %v2054_v55 = vand.u32 4294901760, %v2053_v61  ;;  %v5216_v11 = vsub.f32 %v45_v1, %v5185_v15 }
 0x108   :  { %3807 = vmatpush3.bf16.msra.mxu1 %v5090_v26  ;;  %3785 = vmatprep.subr.bf16.mxu0 %v5075_v37  ;;  %v2047_v37 = vand.u32 4294901760, %v2046_v8  ;;  %v2173_v48 = vand.u32 4294901760, %v2172_v50  ;;  %v5701_v40 = vand.u32 4294901760, %v5134_v28  ;;  %v5702_v32 = vand.u32 4294901760, %v5146_v34 }
 0x109   :  { %3809 = vmatprep.subr.bf16.mxu1 %v5118_v58  ;;  %v2180_v58 = vand.u32 4294901760, %v2179_v20  ;;  %v5228_v17 = vsub.f32 %v5174_v18, %v1917_v10  ;;  %v5231_v1 = vsub.f32 %v5176_v62, %v1920_v7  ;;  %v5703_v61 = vand.u32 4294901760, %v5166_v31 }
 0x10a   :  { %v2060_v54 = vsub.f32 %v5134_v28, %v5701_v40  ;;  %v2067_v26 = vsub.f32 %v5146_v34, %v5702_v32  ;;  %v5569_v18 = vand.u32 4294901760, %v5211_v13  ;;  %v5243_v40 = vpack.c.bf16 %v1914_v27, %v1911_v5 }
 0x10b   :  { %3787 = vmatpush3.bf16.msra.mxu0 %v5108_v60  ;;  %v2186_v50 = vsub.f32 %v5166_v31, %v5703_v61  ;;  %v5245_v62 = vpack.c.bf16 %v1968_v63, %v1965_v42  ;;  %v5571_v32 = vand.u32 4294901760, %v5216_v11  ;;  %v3820_v8 = vpack.c.bf16 %v2180_v58, %v2173_v48 }
 0x10c   :  { %3811 = vmatpush3.bf16.msra.mxu1 %v5132_v41  ;;  %3789 = vmatprep.subr.bf16.mxu0 %v5122_v44  ;;  %v2193_v41 = vsub.f32 %v5168_v6, %v5567_v25  ;;  %v2061_v59 = vand.u32 4294901760, %v2060_v54  ;;  %v2068_v61 = vand.u32 4294901760, %v2067_v26  ;;  %v5704_v25 = vand.u32 4294901760, %v5199_v49 }
 0x10d   :  { %3813 = vmatprep.subr.bf16.mxu1 %v3812_v51  ;;  %v3818_v51 = vpack.c.bf16 %v2054_v55, %v2047_v37  ;;  %v5705_v5 = vand.u32 4294901760, %v5202_v39  ;;  %v5568_v63 = vand.u32 4294901760, %v5228_v17  ;;  %v5570_v27 = vand.u32 4294901760, %v5231_v1 }
 0x10e   :  { %v2074_v20 = vsub.f32 %v5199_v49, %v5704_v25  ;;  %v2187_v37 = vand.u32 4294901760, %v2186_v50  ;;  %v2194_v48 = vand.u32 4294901760, %v2193_v41  ;;  %v5706_v54 = vand.u32 4294901760, %v5208_v23 }
 0x10f   :  { %3791 = vmatpush3.bf16.msra.mxu0 %v5139_v56  ;;  %v2081_v42 = vsub.f32 %v5202_v39, %v5705_v5  ;;  %v2207_v26 = vsub.f32 %v5211_v13, %v5569_v18  ;;  %v1979_v25 = vsub.f32 %v5216_v11, %v5571_v32  ;;  %v5268_v55 = vpack.c.bf16 %v1920_v7, %v1917_v10 }
 0x110   :  { %3815 = vmatpush3.bf16.msra.mxu1 %v3814_v19  ;;  %3793 = vmatprep.subr.bf16.mxu0 %v5164_v22  ;;  %v2200_v19 = vsub.f32 %v5208_v23, %v5706_v54  ;;  %v3822_v58 = vpack.c.bf16 %v2068_v61, %v2061_v59  ;;  %v2075_v50 = vand.u32 4294901760, %v2074_v20  ;;  %v2088_v5 = vsub.f32 %v5228_v17, %v5568_v63 }
 0x111   :  { %3817 = vmatprep.subr.bf16.mxu1 %v3816_v14  ;;  %v3832_v14 = vpack.c.bf16 %v4938_v33, %v4914_v57  ;;  %v2082_v41 = vand.u32 4294901760, %v2081_v42  ;;  %v2095_v54 = vsub.f32 %v5231_v1, %v5570_v27  ;;  %v3824_v7 = vpack.c.bf16 %v2194_v48, %v2187_v37 }
 0x112   :  { %v2201_v10 = vand.u32 4294901760, %v2200_v19  ;;  %v2208_v59 = vand.u32 4294901760, %v2207_v26  ;;  %v1980_v61 = vand.u32 4294901760, %v1979_v25  ;;  %v3836_v42 = vpack.c.bf16 %v4968_v38, %v4966_v36  ;;  %v5708_v25 = vld [vmem:[#allocation16_spill] sm:$0xff] }
 0x113   :  { %3795 = vmatpush3.bf16.msra.mxu0 %v5243_v40  ;;  %v3826_v20 = vpack.c.bf16 %v2082_v41, %v2075_v50  ;;  %v2089_v63 = vand.u32 4294901760, %v2088_v5  ;;  %v2096_v18 = vand.u32 4294901760, %v2095_v54  ;;  %v3840_v48 = vpack.c.bf16 %v5012_v16, %v5003_v52  ;;  %v5710_v50 = vld [vmem:[#allocation21_spill] sm:$0xff]  ;;  %v5711_v41 = vld [vmem:[#allocation19_spill] sm:$0xff]  ;;  %v5712_v5 = vld [vmem:[#allocation20_spill] sm:$0xff] }
 0x114   :  { %3819 = vmatpush3.bf16.msra.mxu1 %v3818_v51  ;;  %3797 = vmatprep.subr.bf16.mxu0 %v5245_v62  ;;  %v3834_v51 = vpack.c.bf16 %v4943_v4, %v4941_v46  ;;  %v3828_v27 = vpack.c.bf16 %v2208_v59, %v2201_v10  ;;  %v3842_v19 = vpack.c.bf16 %v5027_v29, %v5018_v35  ;;  %v5714_v59 = vld [vmem:[#allocation14_spill] sm:$0xff] }
 0x115   :  { %3821 = vmatprep.subr.bf16.mxu1 %v3820_v8  ;;  %v3838_v8 = vpack.c.bf16 %v4987_v12, %v4985_v0  ;;  %v3830_v37 = vpack.c.bf16 %v2096_v18, %v2089_v63  ;;  %v3844_v26 = vpack.c.bf16 %v5037_v43, %v5034_v24  ;;  %v3846_v18 = vpack.c.bf16 %v5064_v45, %v5057_v53  ;;  %v5707_v63 = vld [vmem:[#allocation11_spill] sm:$0xff] }
 0x116   :  { %v3852_v54 = vpack.c.bf16 %v5712_v5, %v5711_v41  ;;  %v3854_v10 = vpack.c.bf16 %v5146_v34, %v5134_v28 }
 0x117   :  { %3799 = vmatpush3.bf16.msra.mxu0 %v5268_v55 }
 0x118   :  { %3823 = vmatpush3.bf16.msra.mxu1 %v3822_v58  ;;  %3833 = vmatprep.subr.bf16.mxu0 %v3832_v14  ;;  %v5709_v58 = vand.u32 4294901760, %v5000_v30  ;;  %v3850_v14 = vpack.c.bf16 %v5120_v9, %v5098_v21 }
 0x119   :  { %3825 = vmatprep.subr.bf16.mxu1 %v3824_v7  ;;  %v5713_v7 = vld [vmem:[#allocation22_spill] sm:$0xff] }
 0x11a   :  { %1981 = vmatmul.mubr.f32.vlgmr.msra.gmra.mrb[12].mxu0 %v1980_v61  ;;  %v5715_v61 = vld [vmem:[#allocation15_spill] sm:$0xff] }
 0x11b   :  { %3835 = vmatpush3.bf16.msra.mxu0 %v3834_v51  ;;  %2348 = vmatprep.mubr.f32.mxu0 %v5000_v30  ;;  %v3856_v30 = vpack.c.bf16 %v5168_v6, %v5166_v31 }
 0x11c   :  { %3827 = vmatpush3.bf16.msra.mxu1 %v3826_v20  ;;  %3837 = vmatprep.subr.bf16.mxu0 %v3836_v42  ;;  %v3858_v42 = vpack.c.bf16 %v5202_v39, %v5199_v49 }
 0x11d   :  { %3829 = vmatprep.subr.bf16.mxu1 %v3828_v27  ;;  %v3848_v27 = vpack.c.bf16 %v5092_v3, %v5081_v47 }
 0x11f   :  { %3839 = vmatpush3.bf16.msra.mxu0 %v3838_v8 }
 0x120   :  { %3831 = vmatpush3.bf16.msra.mxu1 %v3830_v37  ;;  %3841 = vmatprep.subr.bf16.mxu0 %v3840_v48  ;;  %v5716_v37 = vld [vmem:[#allocation17_spill] sm:$0xff]  ;;  %v3860_v48 = vpack.c.bf16 %v5211_v13, %v5208_v23 }
 0x121   :  { %3865 = vmatprep.subr.bf16.mxu1 %v4970_v2 }
 0x123   :  { %2213 = vmatmul.mubr.f32.vlgmr.msra.gmra.mrb[12].mxu1 %v5185_v15  ;;  %3843 = vmatpush3.bf16.msra.mxu0 %v3842_v19  ;;  %v5717_v19 = vld [vmem:[#allocation18_spill] sm:$0xff] }
 0x124   :  { %3867 = vmatpush3.bf16.msra.mxu1 %v5707_v63  ;;  %3845 = vmatprep.subr.bf16.mxu0 %v3844_v26  ;;  %v2753_v26 = vld [vmem:[%s5434_s2] ss:$0 sm:$0xff]  ;;  %s4041_s2 = smov [#allocation7]  }
 0x125   :  { %3869 = vmatprep.subr.bf16.mxu1 %v5708_v25  ;;  %2455 = vmatprep.mubr.f32.mxu1 %v5709_v58  ;;  %v5719_v58 = vand.u32 4294901760, %v4938_v33  ;;  %v5723_v33 = vand.u32 4294901760, %v4968_v38  ;;  %v5728_v38 = vand.u32 4294901760, %v5012_v16  ;;  %v5734_v16 = vand.u32 4294901760, %v5057_v53  ;;  %s2743_s11 = sshll.u32 %s4041_s2, 4  ;;  %s2744_s11 = int_to_ptr.vmem [resolvable:$true] %s2743_s11 }
 0x126   :  { %s4009_s12 = scalar_lea.vmem %s2744_s11, 128  ;;  %p4014_p3 = scmp.lt.s32.totalorder %s2744_s11, %s2744_s11 }
 0x127   :  { %3847 = vmatpush3.bf16.msra.mxu0 %v3846_v18  ;;  %v3862_v18 = vpack.c.bf16 %v5231_v1, %v5228_v17  ;;  %p4010_p2 = scmp.ne.s32.totalorder %s2744_s11, %s4009_s12  ;;  %p4015_p4 = scmp.lt.s32.totalorder %s4009_s12, %s4009_s12 }
 0x128   :  { %3871 = vmatpush3.bf16.msra.mxu1 %v5710_v50  ;;  %3849 = vmatprep.subr.bf16.mxu0 %v3848_v27  ;;  %v5718_v27 = vand.u32 4294901760, %v4914_v57  ;;  %v5722_v57 = vand.u32 4294901760, %v4966_v36  ;;  %v5727_v36 = vand.u32 4294901760, %v5003_v52  ;;  %v5733_v52 = vand.u32 4294901760, %v5216_v11 }
 0x129   :  { %3873 = vmatprep.subr.bf16.mxu1 %v5713_v7  ;;  %p4016_p5 = por %p4015_p4, %p4014_p3 }
 0x12b   :  { %3851 = vmatpush3.bf16.msra.mxu0 %v3850_v14  ;;  %v3896_v14 = vpack.c.bf16 %v5719_v58, %v5718_v27  ;;  %v3904_v27 = vpack.c.bf16 %v5728_v38, %v5727_v36  ;;  %p4017_p6 = pnand %p4016_p5, %p4010_p2 }
 0x12c   :  { %3875 = vmatpush3.bf16.msra.mxu1 %v5714_v59  ;;  %3853 = vmatprep.subr.bf16.mxu0 %v3852_v54 }
 0x12d   :  { %3877 = vmatprep.subr.bf16.mxu1 %v5715_v61  ;;  %v2786_v51 = vpop.f32.mrb[0].mxu0 }
 0x12e   :  { %v2787_v20 = vpop.f32.mrb[1].mxu0 }
 0x12f   :  { %3855 = vmatpush3.bf16.msra.mxu0 %v3854_v10  ;;  %v2788_v8 = vadd.f32 %v2787_v20, %v2786_v51  ;;  %v5720_v51 = vand.u32 4294901760, %v4941_v46  ;;  %v5721_v20 = vand.u32 4294901760, %v4943_v4  ;;  %v5724_v46 = vand.u32 4294901760, %v4985_v0 }
 0x130   :  { %3879 = vmatpush3.bf16.msra.mxu1 %v5716_v37  ;;  %3857 = vmatprep.subr.bf16.mxu0 %v3856_v30  ;;  %v5725_v4 = vand.u32 4294901760, %v4987_v12  ;;  %v5730_v0 = vand.u32 4294901760, %v5027_v29  ;;  %v5731_v12 = vand.u32 4294901760, %v5034_v24  ;;  %v5737_v24 = vand.u32 4294901760, %v5092_v3 }
 0x131   :  { %3881 = vmatprep.subr.bf16.mxu1 %v5717_v19  ;;  %v259_v54 = vadd.f32 %v2788_v8, %v2753_v26  ;;  %v5742_v3 = vand.u32 4294901760, %v5134_v28  ;;  %v5747_v28 = vand.u32 4294901760, %v5202_v39 }
 0x132   :  { %v3902_v26 = vpack.c.bf16 %v5725_v4, %v5724_v46 }
 0x133   :  { %3859 = vmatpush3.bf16.msra.mxu0 %v3858_v42  ;;  %v3898_v42 = vpack.c.bf16 %v5721_v20, %v5720_v51 }
 0x134   :  { %3883 = vmatpush3.bf16.msra.mxu1 %v5108_v60  ;;  %3861 = vmatprep.subr.bf16.mxu0 %v3860_v48  ;;  %v3900_v48 = vpack.c.bf16 %v5723_v33, %v5722_v57 }
 0x135   :  { %3885 = vmatprep.subr.bf16.mxu1 %v5122_v44 }
 0x136   :  { %v2821_v10 = vpop.f32.mrb[0].mxu1 }
 0x137   :  { %v2822_v30 = vpop.f32.mrb[1].mxu1  ;;  %3863 = vmatpush3.bf16.msra.mxu0 %v3862_v18  ;;  %v5726_v18 = vld [vmem:[#allocation12_spill] sm:$0xff] }
 0x138   :  { %v2823_v32 = vadd.f32 %v2822_v30, %v2821_v10  ;;  %3887 = vmatpush3.bf16.msra.mxu1 %v5139_v56  ;;  %3897 = vmatprep.subr.bf16.mxu0 %v3896_v14  ;;  %v5732_v14 = vand.u32 4294901760, %v5037_v43  ;;  %v5736_v10 = vand.u32 4294901760, %v5081_v47  ;;  %v5741_v47 = vand.u32 4294901760, %v5712_v5 }
 0x139   :  { %3889 = vmatprep.subr.bf16.mxu1 %v5164_v22 }
 0x13a   :  { %v491_v8 = vadd.f32 %v2823_v32, %v259_v54  ;;  %2351 = vmatmul.mubr.f32.vlgmr.msra.gmra.mrb[14].mxu0 %v5216_v11  ;;  %v5729_v32 = vand.u32 4294901760, %v5018_v35  ;;  %v3908_v54 = vpack.c.bf16 %v5732_v14, %v5731_v12  ;;  %v5735_v35 = vand.u32 4294901760, %v5064_v45 }
 0x13b   :  { %3899 = vmatpush3.bf16.msra.mxu0 %v3898_v42  ;;  %2625 = vmatprep.mubr.f32.mxu0 %v5726_v18  ;;  %v3912_v43 = vpack.c.bf16 %v5737_v24, %v5736_v10  ;;  %v5739_v11 = vand.u32 4294901760, %v5120_v9  ;;  %v5740_v45 = vand.u32 4294901760, %v5711_v41  ;;  %v5745_v9 = vand.u32 4294901760, %v5168_v6 }
 0x13c   :  { %3891 = vmatpush3.bf16.msra.mxu1 %v5243_v40  ;;  %3901 = vmatprep.subr.bf16.mxu0 %v3900_v48  ;;  %v3906_v58 = vpack.c.bf16 %v5730_v0, %v5729_v32  ;;  %v3910_v29 = vpack.c.bf16 %v5735_v35, %v5734_v16  ;;  %v5751_v42 = vand.u32 4294901760, %v5231_v1 }
 0x13d   :  { %3893 = vmatprep.subr.bf16.mxu1 %v5245_v62 }
 0x13f   :  { %3903 = vmatpush3.bf16.msra.mxu0 %v3902_v26 }
 0x140   :  { %3895 = vmatpush3.bf16.msra.mxu1 %v5268_v55  ;;  %3905 = vmatprep.subr.bf16.mxu0 %v3904_v27 }
 0x141   :  { %3929 = vmatprep.subr.bf16.mxu1 %v4970_v2  ;;  %v5738_v2 = vand.u32 4294901760, %v5098_v21  ;;  %v5744_v21 = vand.u32 4294901760, %v5166_v31  ;;  %v5749_v31 = vand.u32 4294901760, %v5211_v13 }
 0x143   :  { %2459 = vmatmul.mubr.f32.vlgmr.msra.gmra.mrb[14].mxu1 %v5733_v52  ;;  %3907 = vmatpush3.bf16.msra.mxu0 %v3906_v58  ;;  %v3914_v53 = vpack.c.bf16 %v5739_v11, %v5738_v2 }
 0x144   :  { %3931 = vmatpush3.bf16.msra.mxu1 %v5707_v63  ;;  %3909 = vmatprep.subr.bf16.mxu0 %v3908_v54  ;;  %v3916_v63 = vpack.c.bf16 %v5741_v47, %v5740_v45 }
 0x145   :  { %3933 = vmatprep.subr.bf16.mxu1 %v5708_v25  ;;  %2729 = vmatprep.mubr.f32.mxu1 %v5726_v18  ;;  %v5743_v25 = vand.u32 4294901760, %v5146_v34 }
 0x147   :  { %3911 = vmatpush3.bf16.msra.mxu0 %v3910_v29  ;;  %v3918_v30 = vpack.c.bf16 %v5743_v25, %v5742_v3 }
 0x148   :  { %3935 = vmatpush3.bf16.msra.mxu1 %v5710_v50  ;;  %3913 = vmatprep.subr.bf16.mxu0 %v3912_v43  ;;  %v3920_v50 = vpack.c.bf16 %v5745_v9, %v5744_v21 }
 0x149   :  { %3937 = vmatprep.subr.bf16.mxu1 %v5713_v7  ;;  %v5746_v7 = vand.u32 4294901760, %v5199_v49 }
 0x14b   :  { %3915 = vmatpush3.bf16.msra.mxu0 %v3914_v53  ;;  %v3922_v34 = vpack.c.bf16 %v5747_v28, %v5746_v7 }
 0x14c   :  { %3939 = vmatpush3.bf16.msra.mxu1 %v5714_v59  ;;  %3917 = vmatprep.subr.bf16.mxu0 %v3916_v63  ;;  %v5748_v59 = vand.u32 4294901760, %v5208_v23 }
 0x14d   :  { %v2856_v41 = vpop.f32.mrb[2].mxu0  ;;  %3941 = vmatprep.subr.bf16.mxu1 %v5715_v61  ;;  %v5750_v61 = vand.u32 4294901760, %v5228_v17 }
 0x14e   :  { %v2857_v5 = vpop.f32.mrb[3].mxu0  ;;  %v3924_v6 = vpack.c.bf16 %v5749_v31, %v5748_v59 }
 0x14f   :  { %v2858_v51 = vadd.f32 %v2857_v5, %v2856_v41  ;;  %3919 = vmatpush3.bf16.msra.mxu0 %v3918_v30  ;;  %v3926_v49 = vpack.c.bf16 %v5751_v42, %v5750_v61 }
 0x150   :  { %3943 = vmatpush3.bf16.msra.mxu1 %v5716_v37  ;;  %3921 = vmatprep.subr.bf16.mxu0 %v3920_v50 }
 0x151   :  { %v629_v20 = vadd.f32 %v2858_v51, %v491_v8  ;;  %3945 = vmatprep.subr.bf16.mxu1 %v5717_v19 }
 0x153   :  { %3923 = vmatpush3.bf16.msra.mxu0 %v3922_v34 }
 0x154   :  { %3947 = vmatpush3.bf16.msra.mxu1 %v5108_v60  ;;  %3925 = vmatprep.subr.bf16.mxu0 %v3924_v6 }
 0x155   :  { %3949 = vmatprep.subr.bf16.mxu1 %v5122_v44 }
 0x156   :  { %v2891_v39 = vpop.f32.mrb[2].mxu1 }
 0x157   :  { %v2892_v37 = vpop.f32.mrb[3].mxu1  ;;  %3927 = vmatpush3.bf16.msra.mxu0 %v3926_v49 }
 0x158   :  { %v2893_v23 = vadd.f32 %v2892_v37, %v2891_v39  ;;  %3951 = vmatpush3.bf16.msra.mxu1 %v5139_v56 }
 0x159   :  { %3953 = vmatprep.subr.bf16.mxu1 %v5164_v22 }
 0x15a   :  { %v737_v13 = vadd.f32 %v2893_v23, %v629_v20  ;;  %2627 = vmatmul.mubr.f32.vlgmr.msra.gmra.mrb[16].mxu0 %v5185_v15 }
 0x15c   :  { %3955 = vmatpush3.bf16.msra.mxu1 %v5243_v40 }
 0x15d   :  { %3957 = vmatprep.subr.bf16.mxu1 %v5245_v62 }
 0x160   :  { %3959 = vmatpush3.bf16.msra.mxu1 %v5268_v55 }
 0x163   :  { %2731 = vmatmul.mubr.f32.vlgmr.msra.gmra.mrb[16].mxu1 %v5185_v15 }
 0x16d   :  { %v2926_v60 = vpop.f32.mrb[4].mxu0 }
 0x16e   :  { %v2927_v44 = vpop.f32.mrb[5].mxu0 }
 0x16f   :  { %v2928_v17 = vadd.f32 %v2927_v44, %v2926_v60 }
 0x171   :  { %v905_v1 = vadd.f32 %v2928_v17, %v737_v13 }
 0x176   :  { %v2961_v19 = vpop.f32.mrb[4].mxu1 }
 0x177   :  { %v2962_v57 = vpop.f32.mrb[5].mxu1 }
 0x178   :  { %v2963_v56 = vadd.f32 %v2962_v57, %v2961_v19 }
 0x17a   :  { %v1009_v33 = vadd.f32 %v2963_v56, %v905_v1 }
 0x18d   :  { %v2996_v22 = vpop.f32.mrb[6].mxu0 }
 0x18e   :  { %v2997_v48 = vpop.f32.mrb[7].mxu0 }
 0x18f   :  { %v2998_v8 = vadd.f32 %v2997_v48, %v2996_v22 }
 0x191   :  { %v1121_v46 = vadd.f32 %v2998_v8, %v1009_v33 }
 0x196   :  { %v3031_v4 = vpop.f32.mrb[6].mxu1 }
 0x197   :  { %v3032_v40 = vpop.f32.mrb[7].mxu1 }
 0x198   :  { %v3033_v26 = vadd.f32 %v3032_v40, %v3031_v4 }
 0x19a   :  { %v1353_v62 = vadd.f32 %v3033_v26, %v1121_v46 }
 0x1ad   :  { %v3066_v18 = vpop.f32.mrb[8].mxu0 }
 0x1ae   :  { %v3067_v55 = vpop.f32.mrb[9].mxu0 }
 0x1af   :  { %v3068_v36 = vadd.f32 %v3067_v55, %v3066_v18 }
 0x1b1   :  { %v1491_v15 = vadd.f32 %v3068_v36, %v1353_v62 }
 0x1b6   :  { %v3101_v38 = vpop.f32.mrb[8].mxu1 }
 0x1b7   :  { %v3102_v27 = vpop.f32.mrb[9].mxu1 }
 0x1b8   :  { %v3103_v32 = vadd.f32 %v3102_v27, %v3101_v38 }
 0x1ba   :  { %v1599_v0 = vadd.f32 %v3103_v32, %v1491_v15 }
 0x1cd   :  { %v3136_v58 = vpop.f32.mrb[10].mxu0 }
 0x1ce   :  { %v3137_v12 = vpop.f32.mrb[11].mxu0 }
 0x1cf   :  { %v3138_v14 = vadd.f32 %v3137_v12, %v3136_v58 }
 0x1d1   :  { %v1767_v54 = vadd.f32 %v3138_v14, %v1599_v0 }
 0x1d6   :  { %v3171_v52 = vpop.f32.mrb[10].mxu1 }
 0x1d7   :  { %v3172_v16 = vpop.f32.mrb[11].mxu1 }
 0x1d8   :  { %v3173_v35 = vadd.f32 %v3172_v16, %v3171_v52 }
 0x1da   :  { %v1871_v29 = vadd.f32 %v3173_v35, %v1767_v54 }
 0x1ed   :  { %v3206_v10 = vpop.f32.mrb[12].mxu0 }
 0x1ee   :  { %v3207_v24 = vpop.f32.mrb[13].mxu0 }
 0x1ef   :  { %v3208_v43 = vadd.f32 %v3207_v24, %v3206_v10 }
 0x1f1   :  { %v1983_v2 = vadd.f32 %v3208_v43, %v1871_v29 }
 0x1f6   :  { %v3241_v11 = vpop.f32.mrb[12].mxu1 }
 0x1f7   :  { %v3242_v53 = vpop.f32.mrb[13].mxu1 }
 0x1f8   :  { %v3243_v45 = vadd.f32 %v3242_v53, %v3241_v11 }
 0x1fa   :  { %v2215_v47 = vadd.f32 %v3243_v45, %v1983_v2 }
 0x20d   :  { %v3276_v63 = vpop.f32.mrb[14].mxu0 }
 0x20e   :  { %v3277_v3 = vpop.f32.mrb[15].mxu0 }
 0x20f   :  { %v3278_v25 = vadd.f32 %v3277_v3, %v3276_v63 }
 0x211   :  { %v2353_v30 = vadd.f32 %v3278_v25, %v2215_v47 }
 0x216   :  { %v3311_v21 = vpop.f32.mrb[14].mxu1 }
 0x217   :  { %v3312_v9 = vpop.f32.mrb[15].mxu1 }
 0x218   :  { %v3313_v50 = vadd.f32 %v3312_v9, %v3311_v21 }
 0x21a   :  { %v2461_v41 = vadd.f32 %v3313_v50, %v2353_v30 }
 0x22d   :  { %v3346_v5 = vpop.f32.mrb[16].mxu0 }
 0x22e   :  { %v3347_v51 = vpop.f32.mrb[17].mxu0 }
 0x22f   :  { %v3348_v7 = vadd.f32 %v3347_v51, %v3346_v5 }
 0x231   :  { %v2629_v28 = vadd.f32 %v3348_v7, %v2461_v41 }
 0x236   :  { %v3381_v34 = vpop.f32.mrb[16].mxu1 }
 0x237   :  { %v3382_v59 = vpop.f32.mrb[17].mxu1 }
 0x238   :  { %v3383_v31 = vadd.f32 %v3382_v59, %v3381_v34 }
 0x23a   :  { %v2733_v6 = vadd.f32 %v3383_v31, %v2629_v28 }
 0x23c   :  { %2736 = vst [vmem:[#allocation7] sm:$0xff] %v2733_v6 }
 0x23d   :  { %4020 = shalt.err (!%p4017_p6)
}
 0x23e   :  { %s4021_s15 = scalar_lea.hbm %s5435_s3, 128 }
 0x23f   :  { %p4022_p7 = scmp.ne.s32.totalorder %s5435_s3, %s4021_s15  ;;  %p4025_p8 = scmp.lt.u32.totalorder %s4021_s15, %s5435_s3 }
 0x241   :  { %p4027_p9 = pnand %p4025_p8, %p4022_p7 }
 0x243   :  { %4030 = shalt.err (!%p4027_p9)
}
 0x244   :  { %2746 = dma.vmem_to_hbm [thread:$0]  %s2744_s11, 128, %s5435_s3, [#allocation4]  }
 0x245   :  { %4035 = dma.done.wait [#allocation4], 128  }
 0x246   :  { %4036 = vsyncadd [#allocation4], 4294967168 }
 0x247   :  { %2750 = vsyncpa [#allocation3], 1 }
 0x248   :  { %2751 = vsyncpa [#allocation6], 1 }
 0x249   :  { %2752 = vsyncpa [#allocation4], 1 }

</bundles_post_ra>
